<compile_context>
chip_gen: v6e
topology: v6e:2x2x1
jax: 0.10.0
libtpu: 0.0.40
codegen_flags: <defaults>
</compile_context>

<pallas_src>
import math

import jax
import jax.numpy as jnp
from jax.experimental import pallas as pl
from jax.experimental.pallas import tpu as pltpu

C1, C2, KW2 = 16, 32, 5  # conv1d_channels = [16, 32], conv1d_kws[1] = 5 (fixed by the module)


def _pick_tile(n, candidates):
    """Largest candidate tile that divides n; falls back to the full extent."""
    for t in candidates:
        if t <= n and n % t == 0:
            return t
    return n


# ----------------------------------------------------------------------------
# GCN layer, tiled + pipelined:  tanh(A_norm @ (X @ W) + b)
#   grid = (N/tm, N/tk); A streamed as bf16 (tm, tk) tiles, X/W/b resident in VMEM,
#   f32 accumulator scratch, init/finalize via pl.when, row axis "parallel".
# For large N use tm/tk = 256-512 and raise vmem_limit_bytes (v6e has the headroom;
# on v7x re-budget against 64 MiB).
# ----------------------------------------------------------------------------
def gcn_layer_tiled(a_bf16, x, w, b, *, tm=128, tk=128):
    n = a_bf16.shape[0]
    c_in = x.shape[1]
    c_out = w.shape[1]
    tm = _pick_tile(n, (tm, 512, 256, 128, 64, 32, 16, 8))
    tk = _pick_tile(n, (tk, 512, 256, 128))
    grid = (n // tm, n // tk)

    def kernel(a_ref, x_ref, w_ref, b_ref, o_ref, acc_ref):
        kk = pl.program_id(1)

        @pl.when(kk == 0)
        def _init():
            acc_ref[...] = jnp.zeros_like(acc_ref)

        # X (and W) stay resident; compute the k-chunk of X @ W on the fly (MXU has
        # plenty of slack -- the kernel is HBM-bound on the A stream).
        row0 = pl.multiple_of(kk * tk, tk)
        xw = jnp.dot(x_ref[pl.ds(row0, tk), :], w_ref[...],
                     preferred_element_type=jnp.float32)
        acc_ref[...] += jnp.dot(a_ref[...].astype(jnp.float32), xw,
                                preferred_element_type=jnp.float32)

        @pl.when(kk == pl.num_programs(1) - 1)
        def _finalize():
            o_ref[...] = jnp.tanh(acc_ref[...] + b_ref[...])

    return pl.pallas_call(
        kernel,
        out_shape=jax.ShapeDtypeStruct((n, c_out), jnp.float32),
        grid=grid,
        in_specs=[
            pl.BlockSpec((tm, tk), lambda i, kk: (i, kk)),      # A tiles (bf16), streamed
            pl.BlockSpec((n, c_in), lambda i, kk: (0, 0)),      # X resident
            pl.BlockSpec((c_in, c_out), lambda i, kk: (0, 0)),  # W resident
            pl.BlockSpec((1, c_out), lambda i, kk: (0, 0)),     # b resident
        ],
        out_specs=pl.BlockSpec((tm, c_out), lambda i, kk: (i, 0)),
        scratch_shapes=[pltpu.VMEM((tm, c_out), jnp.float32)],
        compiler_params=pltpu.CompilerParams(
            dimension_semantics=("parallel", "arbitrary")),
    )(a_bf16, x, w, b)


# ----------------------------------------------------------------------------
# Fused GCN stack: all layers in one pallas_call with A resident in VMEM.
# Reads A from HBM once (instead of once per layer) and writes one wide, lane-dense
# [N, hidden*num_layers + 1] feature matrix (fixes the [N,1] masked-store problem).
# ----------------------------------------------------------------------------
def gcn_stack_fused(a_bf16, x, layers):
    n = a_bf16.shape[0]
    couts = [int(w.shape[1]) for w, _ in layers]
    d_total = sum(couts)
    nl = len(layers)

    def kernel(a_ref, x_ref, *refs):
        o_ref = refs[-1]
        a = a_ref[...].astype(jnp.float32)
        h = x_ref[...]
        col = 0
        for li in range(nl):
            w_ref = refs[2 * li]
            b_ref = refs[2 * li + 1]
            xw = jnp.dot(h, w_ref[...], preferred_element_type=jnp.float32)
            h = jnp.tanh(jnp.dot(a, xw, preferred_element_type=jnp.float32) + b_ref[...])
            o_ref[:, col:col + couts[li]] = h
            col += couts[li]

    flat_args = []
    in_specs = [pl.BlockSpec((n, n), lambda i: (0, 0)),
                pl.BlockSpec(x.shape, lambda i: (0, 0))]
    for w, b in layers:
        flat_args += [w, b]
        in_specs += [pl.BlockSpec(w.shape, lambda i: (0, 0)),
                     pl.BlockSpec(b.shape, lambda i: (0, 0))]

    return pl.pallas_call(
        kernel,
        out_shape=jax.ShapeDtypeStruct((n, d_total), jnp.float32),
        grid=(1,),
        in_specs=in_specs,
        out_specs=pl.BlockSpec((n, d_total), lambda i: (0, 0)),
    )(a_bf16, x, *flat_args)


def gcn_stack(a_bf16, x, layers, *, force_tiled=False):
    n = a_bf16.shape[0]
    d_total = sum(int(w.shape[1]) for w, _ in layers)
    # Fused (A-resident) budget: bf16 A buffers + its in-register f32 upcast + activations;
    # stay under v5e's 16 MiB default scoped-VMEM limit.
    # TODO(synk): feed the MXU bf16 directly (skip the f32 upcast) and raise
    # vmem_limit_bytes per generation to push this threshold toward N ~ 4-5k.
    fused_bytes = n * n * 8 + 8 * n * (d_total + int(x.shape[1]))
    if (not force_tiled) and fused_bytes < (12 << 20):
        return gcn_stack_fused(a_bf16, x, layers)
    # Per-layer tiled fallback for large N (A streamed once per layer).
    # TODO(synk): the fallback still writes lane-sparse [N, 16]/[N, 1] per-layer outputs;
    # folding them into one wide buffer needs a cross-call accumulator.
    feats = []
    h = x
    for w_, b_ in layers:
        h = gcn_layer_tiled(a_bf16, h, w_, b_)
        feats.append(h)
    return jnp.concatenate(feats, axis=-1)


# ----------------------------------------------------------------------------
# Readout head: conv1 -> relu -> maxpool(2,2) -> conv2 -> relu -> flatten -> lin1
# All B graphs in ONE grid step; conv2 / lin1 are each a single matmul whose operands
# are assembled in VMEM scratch (windowing + torch channel-major flatten).
# ze/zo are the even/odd sort-pool timesteps, flattened to [B*k2, D] (time/batch on the
# sublane axis) -- same total bytes as z, no in-kernel strided relayout needed.
# ----------------------------------------------------------------------------
def head(ze, zo, num_graphs, w1, b1, w2f, b2, w3f, b3):
    b_sz = num_graphs
    bk2, _ = ze.shape
    k2 = bk2 // b_sz
    c1 = w1.shape[1]
    c2 = w2f.shape[1]
    kw2 = w2f.shape[0] // c1
    l2 = k2 - kw2 + 1
    out_dim = b3.shape[1]

    def kernel(ze_ref, zo_ref, w1_ref, b1_ref, w2_ref, b2_ref, w3_ref, b3_ref,
               o_ref, pw_ref, flat_ref):
        w1v = w1_ref[...]
        b1v = b1_ref[...]
        # conv1 (Conv1d(1, C1, D, stride=D) == per-timestep dense) + ReLU, batched over
        # every graph/timestep on the sublane axis; MaxPool1d(2,2) == even/odd max.
        ye = jnp.maximum(jnp.dot(ze_ref[...], w1v, preferred_element_type=jnp.float32) + b1v, 0.0)
        yo = jnp.maximum(jnp.dot(zo_ref[...], w1v, preferred_element_type=jnp.float32) + b1v, 0.0)
        p = jnp.maximum(ye, yo)                                   # [B*k2, C1]

        # conv2 (Conv1d(C1, C2, 5, 1)) as ONE matmul: assemble the 5-wide windows of every
        # graph into a [B*l2, 5*C1] scratch (per-graph so windows never cross graphs).
        for g in range(b_sz):
            for j in range(kw2):
                pw_ref[g * l2:(g + 1) * l2, j * c1:(j + 1) * c1] = \
                    p[g * k2 + j: g * k2 + j + l2, :]
        out2 = jnp.maximum(
            jnp.dot(pw_ref[...], w2_ref[...], preferred_element_type=jnp.float32) + b2_ref[...],
            0.0)                                                  # [B*l2, C2]

        # lin1: torch's channel-major .view(B, -1) is folded into w3f's row permutation;
        # materialize the flattened activations [B, l2*C2] in scratch, then a single
        # K = l2*C2 matmul for the whole batch.
        for g in range(b_sz):
            for t in range(l2):
                flat_ref[g:g + 1, t * c2:(t + 1) * c2] = \
                    out2[g * l2 + t: g * l2 + t + 1, :]
        o_ref[...] = jnp.dot(flat_ref[...], w3_ref[...],
                             preferred_element_type=jnp.float32) + b3_ref[...]

    return pl.pallas_call(
        kernel,
        out_shape=jax.ShapeDtypeStruct((b_sz, out_dim), jnp.float32),
        grid=(1,),
        in_specs=[pl.BlockSpec(ze.shape, lambda i: (0, 0)),
                  pl.BlockSpec(zo.shape, lambda i: (0, 0)),
                  pl.BlockSpec(w1.shape, lambda i: (0, 0)),
                  pl.BlockSpec(b1.shape, lambda i: (0, 0)),
                  pl.BlockSpec(w2f.shape, lambda i: (0, 0)),
                  pl.BlockSpec(b2.shape, lambda i: (0, 0)),
                  pl.BlockSpec(w3f.shape, lambda i: (0, 0)),
                  pl.BlockSpec(b3.shape, lambda i: (0, 0))],
        out_specs=pl.BlockSpec((b_sz, out_dim), lambda i: (0, 0)),
        scratch_shapes=[pltpu.VMEM((b_sz * l2, kw2 * c1), jnp.float32),
                        pltpu.VMEM((b_sz, l2 * c2), jnp.float32)],
    )(ze, zo, w1, b1, w2f, b2, w3f, b3)


# ----------------------------------------------------------------------------
# Glue (plain JAX): normalized adjacency, sort-pool, parameter setup, forward
# ----------------------------------------------------------------------------
def build_norm_adj(key, num_graphs, n_nodes):
    """Block-diagonal D^-1/2 (A + I) D^-1/2 for synthetic random graphs."""
    keys = jax.random.split(key, num_graphs)
    blocks = []
    for g in range(num_graphs):
        m = jax.random.bernoulli(keys[g], 0.4, (n_nodes, n_nodes)).astype(jnp.float32)
        m = jnp.maximum(m, m.T)
        m = m * (1.0 - jnp.eye(n_nodes, dtype=jnp.float32))
        blocks.append(m)
    a = jax.scipy.linalg.block_diag(*blocks)
    a_hat = a + jnp.eye(a.shape[0], dtype=jnp.float32)
    deg = a_hat.sum(axis=1)
    dinv = 1.0 / jnp.sqrt(deg)
    return dinv[:, None] * a_hat * dinv[None, :]


def global_sort_pool(feat, num_graphs, n_nodes, k):
    # TODO(synk): per-graph descending sort / zero-padding for n_nodes < k and torch-exact
    # tie-breaking stay in plain JAX (data-dependent gather, no clean Pallas equivalent).
    d = feat.shape[-1]
    xb = feat.reshape(num_graphs, n_nodes, d)
    order = jnp.argsort(-xb[:, :, -1], axis=-1)          # descending by last channel
    xb = jnp.take_along_axis(xb, order[:, :, None], axis=1)
    return xb[:, :k, :]                                  # [B, k, D]  (n_nodes >= k here)


def init_params(key, in_channels, hidden_channels, out_channels, num_layers, k):
    total_latent_dim = hidden_channels * num_layers + 1
    k2 = k // 2
    l2 = k2 - KW2 + 1
    dense_dim = l2 * C2

    gcn_dims = [(in_channels, hidden_channels)]
    gcn_dims += [(hidden_channels, hidden_channels)] * (num_layers - 1)
    gcn_dims += [(hidden_channels, 1)]

    keys = jax.random.split(key, 2 * len(gcn_dims) + 6)
    idx = 0
    gcn = []
    for cin, cout in gcn_dims:
        s = 1.0 / math.sqrt(cin)
        w_ = jax.random.uniform(keys[idx], (cin, cout), jnp.float32, -s, s); idx += 1
        b_ = jax.random.uniform(keys[idx], (1, cout), jnp.float32, -s, s); idx += 1
        gcn.append((w_, b_))

    # conv1: torch weight [C1, 1, D] stored as [D, C1]
    s = 1.0 / math.sqrt(total_latent_dim)
    w1 = jax.random.uniform(keys[idx], (total_latent_dim, C1), jnp.float32, -s, s); idx += 1
    b1 = jax.random.uniform(keys[idx], (1, C1), jnp.float32, -s, s); idx += 1
    # conv2: torch weight [C2, C1, 5] stored as [5, C1, C2]; w2f = [(j,cin) -> 5*C1, C2]
    s = 1.0 / math.sqrt(C1 * KW2)
    w2 = jax.random.uniform(keys[idx], (KW2, C1, C2), jnp.float32, -s, s); idx += 1
    b2 = jax.random.uniform(keys[idx], (1, C2), jnp.float32, -s, s); idx += 1
    # lin1: torch weight [out, dense_dim] stored transposed, rows in torch's channel-major
    # order (c*l2 + t); w3f permutes rows to the kernel's time-major order (t*C2 + c).
    s = 1.0 / math.sqrt(dense_dim)
    w3 = jax.random.uniform(keys[idx], (dense_dim, out_channels), jnp.float32, -s, s); idx += 1
    b3 = jax.random.uniform(keys[idx], (1, out_channels), jnp.float32, -s, s); idx += 1

    w2f = w2.reshape(KW2 * C1, C2)
    w3f = w3.reshape(C2, l2, out_channels).transpose(1, 0, 2).reshape(l2 * C2, out_channels)
    return {"gcn": gcn, "w1": w1, "b1": b1, "w2": w2, "w2f": w2f, "b2": b2,
            "w3": w3, "w3f": w3f, "b3": b3}


def head_from_z(z, params):
    b_sz, k, d = z.shape
    k2 = k // 2                                          # MaxPool1d(2,2) drops a trailing odd step
    ze = z[:, 0:2 * k2:2, :].reshape(b_sz * k2, d)
    zo = z[:, 1:2 * k2:2, :].reshape(b_sz * k2, d)
    return head(ze, zo, b_sz, params["w1"], params["b1"], params["w2f"], params["b2"],
                params["w3f"], params["b3"])


def dgcnn_forward(x, a_norm, params, num_graphs, n_nodes, k, *, force_tiled=False):
    a_bf16 = a_norm.astype(jnp.bfloat16)                 # half the HBM bytes of the A stream
    feats = gcn_stack(a_bf16, x, params["gcn"], force_tiled=force_tiled)
    z = global_sort_pool(feats, num_graphs, n_nodes, k)  # [B, k, D]
    return head_from_z(z, params)


# ----------------------------------------------------------------------------
# Pure-JAX references (same bf16-quantized A; all matmuls at HIGHEST precision)
# ----------------------------------------------------------------------------
def reference_gcn(x, a, gcn_params):
    hi = jax.lax.Precision.HIGHEST
    h = x
    feats = []
    for w, b in gcn_params:
        h = jnp.tanh(jnp.dot(a, jnp.dot(h, w, precision=hi), precision=hi) + b)
        feats.append(h)
    return jnp.concatenate(feats, axis=-1)


def reference_head(z, params):
    hi = jax.lax.Precision.HIGHEST
    b_sz, k, _ = z.shape
    y1 = jnp.maximum(jnp.einsum("bkd,dc->bkc", z, params["w1"], precision=hi) + params["b1"], 0.0)
    k2 = k // 2
    y1 = y1[:, :2 * k2, :]
    p = jnp.maximum(y1[:, 0::2, :], y1[:, 1::2, :])
    kw2 = params["w2"].shape[0]
    l2 = k2 - kw2 + 1
    acc = jnp.zeros((b_sz, l2, params["w2"].shape[2]), jnp.float32)
    for j in range(kw2):
        acc = acc + jnp.einsum("blc,cd->bld", p[:, j:j + l2, :], params["w2"][j], precision=hi)
    out2 = jnp.maximum(acc + params["b2"], 0.0)
    flat = jnp.transpose(out2, (0, 2, 1)).reshape(b_sz, -1)   # torch channel-major .view(B, -1)
    return jnp.dot(flat, params["w3"], precision=hi) + params["b3"]


if __name__ == "__main__":
    in_channels, hidden_channels, out_channels, num_layers = 4, 16, 3, 2
    num_graphs, n_nodes = 2, 128                         # N = 256 -> exercises the (2, 2) tiled grid

    # emulate DGCNN.__init__ k selection (0.6 quantile of graph sizes, min 10)
    sizes = sorted([n_nodes] * num_graphs)
    k = sizes[int(math.ceil(0.6 * len(sizes))) - 1]
    k = max(10, int(k))

    key = jax.random.PRNGKey(0)
    k_x, k_adj, k_par = jax.random.split(key, 3)
    x = jax.random.normal(k_x, (num_graphs * n_nodes, in_channels), jnp.float32)
    a_norm = build_norm_adj(k_adj, num_graphs, n_nodes)
    params = init_params(k_par, in_channels, hidden_channels, out_channels, num_layers, k)

    a_bf16 = a_norm.astype(jnp.bfloat16)
    a_ref = a_bf16.astype(jnp.float32)                   # reference uses the same quantized A

    # --- GCN stage: validate both the fused (A-resident) and the tiled/pipelined paths ---
    feats_fused = jax.block_until_ready(gcn_stack(a_bf16, x, params["gcn"]))
    feats_tiled = jax.block_until_ready(gcn_stack(a_bf16, x, params["gcn"], force_tiled=True))
    feats_ref = reference_gcn(x, a_ref, params["gcn"])
    assert bool(jnp.max(jnp.abs(feats_fused - feats_ref)) < 2e-3)
    assert bool(jnp.max(jnp.abs(feats_tiled - feats_ref)) < 2e-3)

    # --- full forward (fused GCN path) + head check on the same sort-pooled input ---
    out = jax.block_until_ready(dgcnn_forward(x, a_norm, params, num_graphs, n_nodes, k))
    z = global_sort_pool(feats_fused, num_graphs, n_nodes, k)
    out_ref = reference_head(z, params)
    assert out.shape == (num_graphs, out_channels)
    assert bool(jnp.max(jnp.abs(out - out_ref)) < 2e-3)

    print("KERNEL_OK")
</pallas_src>

<mosaic_0001>
module attributes {stable_mosaic.version = 11 : i64} {
  func.func @kernel(%arg0: i32, %arg1: memref<256x256xbf16, #tpu.memory_space<vmem>>, %arg2: memref<256x4xf32, #tpu.memory_space<vmem>>, %arg3: memref<4x16xf32, #tpu.memory_space<vmem>>, %arg4: memref<1x16xf32, #tpu.memory_space<vmem>>, %arg5: memref<16x16xf32, #tpu.memory_space<vmem>>, %arg6: memref<1x16xf32, #tpu.memory_space<vmem>>, %arg7: memref<16x1xf32, #tpu.memory_space<vmem>>, %arg8: memref<1x1xf32, #tpu.memory_space<vmem>>, %arg9: memref<256x33xf32, #tpu.memory_space<vmem>>) attributes {dimension_semantics = [#tpu.dimension_semantics<arbitrary>], iteration_bounds = array<i64: 1>, scalar_prefetch = 0 : i64, scratch_operands = 0 : i64, tpu.core_type = #tpu.core_type<tc>, window_params = [{pipeline_mode = #tpu.pipeline_mode<synchronous>, transform_indices = @transform_0, window_bounds = array<i64: 256, 256>}, {pipeline_mode = #tpu.pipeline_mode<synchronous>, transform_indices = @transform_1, window_bounds = array<i64: 256, 4>}, {pipeline_mode = #tpu.pipeline_mode<synchronous>, transform_indices = @transform_2, window_bounds = array<i64: 4, 16>}, {pipeline_mode = #tpu.pipeline_mode<synchronous>, transform_indices = @transform_3, window_bounds = array<i64: 1, 16>}, {pipeline_mode = #tpu.pipeline_mode<synchronous>, transform_indices = @transform_4, window_bounds = array<i64: 16, 16>}, {pipeline_mode = #tpu.pipeline_mode<synchronous>, transform_indices = @transform_5, window_bounds = array<i64: 1, 16>}, {pipeline_mode = #tpu.pipeline_mode<synchronous>, transform_indices = @transform_6, window_bounds = array<i64: 16, 1>}, {pipeline_mode = #tpu.pipeline_mode<synchronous>, transform_indices = @transform_7, window_bounds = array<i64: 1, 1>}, {pipeline_mode = #tpu.pipeline_mode<synchronous>, transform_indices = @transform_8, window_bounds = array<i64: 256, 33>}]} {
    %c0 = arith.constant 0 : index
    %c0_0 = arith.constant 0 : index
    %0 = vector.load %arg1[%c0, %c0_0] : memref<256x256xbf16, #tpu.memory_space<vmem>>, vector<256x256xbf16>
    %1 = arith.extf %0 : vector<256x256xbf16> to vector<256x256xf32>
    %c0_1 = arith.constant 0 : index
    %c0_2 = arith.constant 0 : index
    %2 = vector.load %arg2[%c0_1, %c0_2] : memref<256x4xf32, #tpu.memory_space<vmem>>, vector<256x4xf32>
    %c0_3 = arith.constant 0 : index
    %c0_4 = arith.constant 0 : index
    %3 = vector.load %arg3[%c0_3, %c0_4] : memref<4x16xf32, #tpu.memory_space<vmem>>, vector<4x16xf32>
    %cst = arith.constant dense<0.000000e+00> : vector<256x16xf32>
    %4 = tpu.matmul %2, %3, %cst {dimension_numbers = #tpu.dot_dimension_numbers<[1], [0], [0], [1], [0, 0, 1, 1], [], []>} : vector<256x4xf32>, vector<4x16xf32>, vector<256x16xf32> -> vector<256x16xf32>
    %cst_5 = arith.constant dense<0.000000e+00> : vector<256x16xf32>
    %5 = tpu.matmul %1, %4, %cst_5 {dimension_numbers = #tpu.dot_dimension_numbers<[1], [0], [0], [1], [0, 0, 1, 1], [], []>} : vector<256x256xf32>, vector<256x16xf32>, vector<256x16xf32> -> vector<256x16xf32>
    %c0_6 = arith.constant 0 : index
    %c0_7 = arith.constant 0 : index
    %6 = vector.load %arg4[%c0_6, %c0_7] : memref<1x16xf32, #tpu.memory_space<vmem>>, vector<1x16xf32>
    %7 = vector.broadcast %6 : vector<1x16xf32> to vector<256x16xf32>
    %8 = arith.addf %5, %7 : vector<256x16xf32>
    %9 = math.tanh %8 : vector<256x16xf32>
    %c0_8 = arith.constant 0 : index
    %c0_9 = arith.constant 0 : index
    %10 = vector.load %arg9[%c0_8, %c0_9] : memref<256x33xf32, #tpu.memory_space<vmem>>, vector<256x16xf32>
    tpu.vector_store %arg9[%c0_8, %c0_9], %9 {strides = array<i32>} : memref<256x33xf32, #tpu.memory_space<vmem>>, vector<256x16xf32>,
    %c0_10 = arith.constant 0 : index
    %c0_11 = arith.constant 0 : index
    %11 = vector.load %arg5[%c0_10, %c0_11] : memref<16x16xf32, #tpu.memory_space<vmem>>, vector<16x16xf32>
    %cst_12 = arith.constant dense<0.000000e+00> : vector<256x16xf32>
    %12 = tpu.matmul %9, %11, %cst_12 {dimension_numbers = #tpu.dot_dimension_numbers<[1], [0], [0], [1], [0, 0, 1, 1], [], []>} : vector<256x16xf32>, vector<16x16xf32>, vector<256x16xf32> -> vector<256x16xf32>
    %cst_13 = arith.constant dense<0.000000e+00> : vector<256x16xf32>
    %13 = tpu.matmul %1, %12, %cst_13 {dimension_numbers = #tpu.dot_dimension_numbers<[1], [0], [0], [1], [0, 0, 1, 1], [], []>} : vector<256x256xf32>, vector<256x16xf32>, vector<256x16xf32> -> vector<256x16xf32>
    %c0_14 = arith.constant 0 : index
    %c0_15 = arith.constant 0 : index
    %14 = vector.load %arg6[%c0_14, %c0_15] : memref<1x16xf32, #tpu.memory_space<vmem>>, vector<1x16xf32>
    %15 = vector.broadcast %14 : vector<1x16xf32> to vector<256x16xf32>
    %16 = arith.addf %13, %15 : vector<256x16xf32>
    %17 = math.tanh %16 : vector<256x16xf32>
    %c0_16 = arith.constant 0 : index
    %c16 = arith.constant 16 : index
    %18 = vector.load %arg9[%c0_16, %c16] : memref<256x33xf32, #tpu.memory_space<vmem>>, vector<256x16xf32>
    tpu.vector_store %arg9[%c0_16, %c16], %17 {strides = array<i32>} : memref<256x33xf32, #tpu.memory_space<vmem>>, vector<256x16xf32>,
    %c0_17 = arith.constant 0 : index
    %c0_18 = arith.constant 0 : index
    %19 = vector.load %arg7[%c0_17, %c0_18] : memref<16x1xf32, #tpu.memory_space<vmem>>, vector<16x1xf32>
    %cst_19 = arith.constant dense<0.000000e+00> : vector<256x1xf32>
    %20 = tpu.matmul %17, %19, %cst_19 {dimension_numbers = #tpu.dot_dimension_numbers<[1], [0], [0], [1], [0, 0, 1, 1], [], []>} : vector<256x16xf32>, vector<16x1xf32>, vector<256x1xf32> -> vector<256x1xf32>
    %cst_20 = arith.constant dense<0.000000e+00> : vector<256x1xf32>
    %21 = tpu.matmul %1, %20, %cst_20 {dimension_numbers = #tpu.dot_dimension_numbers<[1], [0], [0], [1], [0, 0, 1, 1], [], []>} : vector<256x256xf32>, vector<256x1xf32>, vector<256x1xf32> -> vector<256x1xf32>
    %c0_21 = arith.constant 0 : index
    %c0_22 = arith.constant 0 : index
    %22 = vector.load %arg8[%c0_21, %c0_22] : memref<1x1xf32, #tpu.memory_space<vmem>>, vector<1x1xf32>
    %23 = vector.broadcast %22 : vector<1x1xf32> to vector<256x1xf32>
    %24 = arith.addf %21, %23 : vector<256x1xf32>
    %25 = math.tanh %24 : vector<256x1xf32>
    %c0_23 = arith.constant 0 : index
    %c32 = arith.constant 32 : index
    %26 = vector.load %arg9[%c0_23, %c32] : memref<256x33xf32, #tpu.memory_space<vmem>>, vector<256x1xf32>
    tpu.vector_store %arg9[%c0_23, %c32], %25 {strides = array<i32>} : memref<256x33xf32, #tpu.memory_space<vmem>>, vector<256x1xf32>,
    return
  }
  func.func @transform_0(%arg0: i32) -> (i32, i32) {
    %c0_i32 = arith.constant 0 : i32
    %c0_i32_0 = arith.constant 0 : i32
    %c0_i32_1 = arith.constant 0 : i32
    return %c0_i32, %c0_i32_0 : i32, i32
  }
  func.func @transform_1(%arg0: i32) -> (i32, i32) {
    %c0_i32 = arith.constant 0 : i32
    %c0_i32_0 = arith.constant 0 : i32
    %c0_i32_1 = arith.constant 0 : i32
    return %c0_i32, %c0_i32_0 : i32, i32
  }
  func.func @transform_2(%arg0: i32) -> (i32, i32) {
    %c0_i32 = arith.constant 0 : i32
    %c0_i32_0 = arith.constant 0 : i32
    %c0_i32_1 = arith.constant 0 : i32
    return %c0_i32, %c0_i32_0 : i32, i32
  }
  func.func @transform_3(%arg0: i32) -> (i32, i32) {
    %c0_i32 = arith.constant 0 : i32
    %c0_i32_0 = arith.constant 0 : i32
    %c0_i32_1 = arith.constant 0 : i32
    return %c0_i32, %c0_i32_0 : i32, i32
  }
  func.func @transform_4(%arg0: i32) -> (i32, i32) {
    %c0_i32 = arith.constant 0 : i32
    %c0_i32_0 = arith.constant 0 : i32
    %c0_i32_1 = arith.constant 0 : i32
    return %c0_i32, %c0_i32_0 : i32, i32
  }
  func.func @transform_5(%arg0: i32) -> (i32, i32) {
    %c0_i32 = arith.constant 0 : i32
    %c0_i32_0 = arith.constant 0 : i32
    %c0_i32_1 = arith.constant 0 : i32
    return %c0_i32, %c0_i32_0 : i32, i32
  }
  func.func @transform_6(%arg0: i32) -> (i32, i32) {
    %c0_i32 = arith.constant 0 : i32
    %c0_i32_0 = arith.constant 0 : i32
    %c0_i32_1 = arith.constant 0 : i32
    return %c0_i32, %c0_i32_0 : i32, i32
  }
  func.func @transform_7(%arg0: i32) -> (i32, i32) {
    %c0_i32 = arith.constant 0 : i32
    %c0_i32_0 = arith.constant 0 : i32
    %c0_i32_1 = arith.constant 0 : i32
    return %c0_i32, %c0_i32_0 : i32, i32
  }
  func.func @transform_8(%arg0: i32) -> (i32, i32) {
    %c0_i32 = arith.constant 0 : i32
    %c0_i32_0 = arith.constant 0 : i32
    %c0_i32_1 = arith.constant 0 : i32
    return %c0_i32, %c0_i32_0 : i32, i32
  }
}

</mosaic_0001>

<bundles_post_ra>
// kernel: tpu_custom_call.1
= control target key start
LH: loop header
LB: loop body
LE: loop exit
PB: predicated region body
PF: predicated region fallthrough
CT: control target
= control target key end

     0   :  { %vm257_vm0 = vcmask 1043456   ;;  %vm160_vm1 = vcmask 31744   ;;  %v4146_v33 = vmov 0.0   ;;  %vm750_vm2 = vcmask 130048   ;;  %s4137_s2 = inlined_call_operand.vmem [shape: f32[4,16], index: 2, kind: input, shape index: {}]   ;;  %s4138_s1 = inlined_call_operand.vmem [shape: f32[256,4], index: 1, kind: input, shape index: {}]   ;;  %s4139_s0 = inlined_call_operand.vmem [shape: bf16[256,256], index: 0, kind: input, shape index: {}]   ;;  %s4140_s4 = inlined_call_operand.vmem [shape: f32[16,16], index: 4, kind: input, shape index: {}]   ;;  %s4141_s3 = inlined_call_operand.vmem [shape: f32[1,16], index: 3, kind: input, shape index: {}]   ;;  %s4142_s8 = inlined_call_operand.vmem [shape: f32[256,33], index: 8, kind: output, shape index: {}]   ;;  %s4143_s6 = inlined_call_operand.vmem [shape: f32[16,1], index: 6, kind: input, shape index: {}]   ;;  %s4144_s5 = inlined_call_operand.vmem [shape: f32[1,16], index: 5, kind: input, shape index: {}]   ;;  %s4145_s7 = inlined_call_operand.<no memory space> [shape: f32[1,1], index: 7, kind: input, shape index: {}]  }
   0x1   :  { %v159_v0 = vld [vmem:[%s4137_s2] sm:$0xf]  ;;  %v128_v2 = vld [vmem:[%s4138_s1 + $0x8] sm:$0xff]  ;;  %v129_v3 = vld [vmem:[%s4138_s1 + $0x10] sm:$0xff]  ;;  %493 = vmatprep.subr.mxu1 %v4146_v33  ;;  %vm1498_vm3 = vcmask 261248   ;;  %vm2214_vm4 = vcmask 269568  }
   0x2   :  { %v127_v1 = vld [vmem:[%s4138_s1] sm:$0xff]  ;;  %2452 = vmatprep.subr.msk.mxu0 %vm257_vm0, %v159_v0  ;;  %v130_v4 = vld [vmem:[%s4138_s1 + $0x18] sm:$0xff]  ;;  %v132_v6 = vld [vmem:[%s4138_s1 + $0x28] sm:$0xff] }
   0x3   :  { %2454 = vmatprep.mubr.msk.f32.mxu0 %vm160_vm1, %v127_v1  ;;  %2453 = vmatpush3.msk.msra.mxu0 %vm257_vm0, %v159_v0  ;;  %v131_v5 = vld [vmem:[%s4138_s1 + $0x20] sm:$0xff]  ;;  %v133_v7 = vld [vmem:[%s4138_s1 + $0x30] sm:$0xff]  ;;  %v134_v8 = vld [vmem:[%s4138_s1 + $0x38] sm:$0xff] }
   0x4   :  { %2455 = vmatmul.mubr.msk.f32.vlgmr.msra.gmra.mxu0 %vm160_vm1, %v128_v2  ;;  %v135_v9 = vld [vmem:[%s4138_s1 + $0x40] sm:$0xff]  ;;  %v136_v10 = vld [vmem:[%s4138_s1 + $0x48] sm:$0xff]  ;;  %v137_v11 = vld [vmem:[%s4138_s1 + $0x50] sm:$0xff] }
   0x5   :  { %2457 = vmatprep.mubr.msk.f32.mxu0 %vm160_vm1, %v129_v3  ;;  %v138_v12 = vld [vmem:[%s4138_s1 + $0x58] sm:$0xff]  ;;  %v139_v13 = vld [vmem:[%s4138_s1 + $0x60] sm:$0xff]  ;;  %v140_v14 = vld [vmem:[%s4138_s1 + $0x68] sm:$0xff] }
   0x6   :  { %v141_v15 = vld [vmem:[%s4138_s1 + $0x70] sm:$0xff]  ;;  %v142_v16 = vld [vmem:[%s4138_s1 + $0x78] sm:$0xff]  ;;  %v143_v17 = vld [vmem:[%s4138_s1 + $0x80] sm:$0xff] }
   0x7   :  { %v144_v18 = vld [vmem:[%s4138_s1 + $0x88] sm:$0xff]  ;;  %v145_v19 = vld [vmem:[%s4138_s1 + $0x90] sm:$0xff]  ;;  %v146_v20 = vld [vmem:[%s4138_s1 + $0x98] sm:$0xff] }
   0x8   :  { %2458 = vmatmul.mubr.msk.f32.gmra.mxu0 %vm160_vm1, %v130_v4  ;;  %v147_v21 = vld [vmem:[%s4138_s1 + $0xa0] sm:$0xff]  ;;  %v148_v22 = vld [vmem:[%s4138_s1 + $0xa8] sm:$0xff]  ;;  %v149_v23 = vld [vmem:[%s4138_s1 + $0xb0] sm:$0xff] }
   0x9   :  { %2460 = vmatprep.mubr.msk.f32.mxu0 %vm160_vm1, %v131_v5  ;;  %v150_v24 = vld [vmem:[%s4138_s1 + $0xb8] sm:$0xff]  ;;  %v151_v25 = vld [vmem:[%s4138_s1 + $0xc0] sm:$0xff]  ;;  %v152_v26 = vld [vmem:[%s4138_s1 + $0xc8] sm:$0xff] }
   0xa   :  { %v153_v27 = vld [vmem:[%s4138_s1 + $0xd0] sm:$0xff]  ;;  %v154_v28 = vld [vmem:[%s4138_s1 + $0xd8] sm:$0xff]  ;;  %v155_v29 = vld [vmem:[%s4138_s1 + $0xe0] sm:$0xff] }
   0xb   :  { %v156_v30 = vld [vmem:[%s4138_s1 + $0xe8] sm:$0xff]  ;;  %v157_v31 = vld [vmem:[%s4138_s1 + $0xf0] sm:$0xff]  ;;  %v158_v32 = vld [vmem:[%s4138_s1 + $0xf8] sm:$0xff] }
   0xc   :  { %2461 = vmatmul.mubr.msk.f32.gmra.mxu0 %vm160_vm1, %v132_v6  ;;  %v2984_v34 = vld [vmem:[%s4139_s0] sm:$0xff]  ;;  %v32_v4 = vld [vmem:[%s4139_s0 + $0x8] sm:$0xff] }
   0xd   :  { %2463 = vmatprep.mubr.msk.f32.mxu0 %vm160_vm1, %v133_v7  ;;  %v2987_v35 = vunpack.c.h.bf16 %v2984_v34  ;;  %v3028_v5 = vunpack.c.l.bf16 %v2984_v34  ;;  %v3031_v6 = vunpack.c.h.bf16 %v32_v4  ;;  %v33_v7 = vld [vmem:[%s4139_s0 + $0x10] sm:$0xff] }
   0xf   :  { %557 = vmatprep.mubr.f32.mxu1 %v2987_v35 }
  0x10   :  { %2464 = vmatmul.mubr.msk.f32.gmra.mxu0 %vm160_vm1, %v134_v8  ;;  %v3039_v8 = vunpack.c.l.bf16 %v32_v4 }
  0x11   :  { %2466 = vmatprep.mubr.msk.f32.mxu0 %vm160_vm1, %v135_v9  ;;  %v3043_v9 = vunpack.c.h.bf16 %v33_v7 }
  0x14   :  { %2467 = vmatmul.mubr.msk.f32.gmra.mxu0 %vm160_vm1, %v136_v10  ;;  %v34_v10 = vld [vmem:[%s4139_s0 + $0x18] sm:$0xff] }
  0x15   :  { %2469 = vmatprep.mubr.msk.f32.mxu0 %vm160_vm1, %v137_v11  ;;  %v3049_v11 = vunpack.c.l.bf16 %v33_v7  ;;  %v53_v7 = vld [vmem:[%s4139_s0 + $0xb0] sm:$0xff] }
  0x18   :  { %2470 = vmatmul.mubr.msk.f32.gmra.mxu0 %vm160_vm1, %v138_v12  ;;  %v3052_v12 = vunpack.c.h.bf16 %v34_v10 }
  0x19   :  { %2472 = vmatprep.mubr.msk.f32.mxu0 %vm160_vm1, %v139_v13  ;;  %v35_v13 = vld [vmem:[%s4139_s0 + $0x20] sm:$0xff] }
  0x1c   :  { %2473 = vmatmul.mubr.msk.f32.gmra.mxu0 %vm160_vm1, %v140_v14  ;;  %v3058_v14 = vunpack.c.l.bf16 %v34_v10 }
  0x1d   :  { %2475 = vmatprep.mubr.msk.f32.mxu0 %vm160_vm1, %v141_v15  ;;  %v3061_v15 = vunpack.c.h.bf16 %v35_v13 }
  0x20   :  { %2476 = vmatmul.mubr.msk.f32.gmra.mxu0 %vm160_vm1, %v142_v16  ;;  %v36_v16 = vld [vmem:[%s4139_s0 + $0x28] sm:$0xff] }
  0x21   :  { %2478 = vmatprep.mubr.msk.f32.mxu0 %vm160_vm1, %v143_v17  ;;  %v3067_v17 = vunpack.c.l.bf16 %v35_v13  ;;  %v784_v13 = vld [vmem:[%s4140_s4 + $0x8] sm:$0xff] }
  0x22   :  { %2502 = vmatprep.subr.mxu0 %v784_v13 }
  0x23   :  { %2503 = vmatpush3.msra.mxu0 %v784_v13 }
  0x24   :  { %2479 = vmatmul.mubr.msk.f32.gmra.mxu0 %vm160_vm1, %v144_v18  ;;  %v3070_v18 = vunpack.c.h.bf16 %v36_v16 }
  0x25   :  { %2481 = vmatprep.mubr.msk.f32.mxu0 %vm160_vm1, %v145_v19  ;;  %v37_v19 = vld [vmem:[%s4139_s0 + $0x30] sm:$0xff] }
  0x28   :  { %2482 = vmatmul.mubr.msk.f32.gmra.mxu0 %vm160_vm1, %v146_v20  ;;  %v3076_v20 = vunpack.c.l.bf16 %v36_v16  ;;  %v3226_v16 = vunpack.c.h.bf16 %v53_v7 }
  0x29   :  { %2484 = vmatprep.mubr.msk.f32.mxu0 %vm160_vm1, %v147_v21  ;;  %v3079_v21 = vunpack.c.h.bf16 %v37_v19 }
  0x2c   :  { %2485 = vmatmul.mubr.msk.f32.gmra.mxu0 %vm160_vm1, %v148_v22  ;;  %v38_v22 = vld [vmem:[%s4139_s0 + $0x38] sm:$0xff] }
  0x2d   :  { %2487 = vmatprep.mubr.msk.f32.mxu0 %vm160_vm1, %v149_v23  ;;  %v3085_v23 = vunpack.c.l.bf16 %v37_v19  ;;  %v54_v19 = vld [vmem:[%s4139_s0 + $0xb8] sm:$0xff] }
  0x30   :  { %2488 = vmatmul.mubr.msk.f32.gmra.mxu0 %vm160_vm1, %v150_v24  ;;  %v3088_v24 = vunpack.c.h.bf16 %v38_v22 }
  0x31   :  { %2490 = vmatprep.mubr.msk.f32.mxu0 %vm160_vm1, %v151_v25  ;;  %v39_v25 = vld [vmem:[%s4139_s0 + $0x40] sm:$0xff] }
  0x34   :  { %2491 = vmatmul.mubr.msk.f32.gmra.mxu0 %vm160_vm1, %v152_v26  ;;  %v3094_v26 = vunpack.c.l.bf16 %v38_v22  ;;  %v783_v22 = vld [vmem:[%s4140_s4] sm:$0xff] }
  0x35   :  { %2493 = vmatprep.mubr.msk.f32.mxu0 %vm160_vm1, %v153_v27  ;;  %v3097_v27 = vunpack.c.h.bf16 %v39_v25  ;;  %2504 = vmatprep.subr.mxu0 %v783_v22 }
  0x36   :  { %2505 = vmatpush3.msra.mxu0 %v783_v22  ;;  %v60_v22 = vld [vmem:[%s4139_s0 + $0xe8] sm:$0xff] }
  0x37   :  { %1113 = vmatprep.subr.mxu0 %v4146_v33 }
  0x38   :  { %2494 = vmatmul.mubr.msk.f32.gmra.mxu0 %vm160_vm1, %v154_v28  ;;  %v40_v28 = vld [vmem:[%s4139_s0 + $0x48] sm:$0xff] }
  0x39   :  { %2496 = vmatprep.mubr.msk.f32.mxu0 %vm160_vm1, %v155_v29  ;;  %v3103_v29 = vunpack.c.l.bf16 %v39_v25  ;;  %v3235_v25 = vunpack.c.l.bf16 %v53_v7  ;;  %v59_v7 = vld [vmem:[%s4139_s0 + $0xe0] sm:$0xff] }
  0x3c   :  { %2497 = vmatmul.mubr.msk.f32.gmra.mxu0 %vm160_vm1, %v156_v30  ;;  %v3106_v30 = vunpack.c.h.bf16 %v40_v28 }
  0x3d   :  { %2499 = vmatprep.mubr.msk.f32.mxu0 %vm160_vm1, %v157_v31  ;;  %v41_v31 = vld [vmem:[%s4139_s0 + $0x50] sm:$0xff] }
  0x3e   :  { %v3115_v34 = vunpack.c.h.bf16 %v41_v31 }
  0x40   :  { %2500 = vmatmul.mubr.msk.f32.gmra.mxu0 %vm160_vm1, %v158_v32  ;;  %v3112_v32 = vunpack.c.l.bf16 %v40_v28  ;;  %v3238_v28 = vunpack.c.h.bf16 %v54_v19 }
  0x42   :  { %4184 = vst [vmem:[#allocation3_spill] sm:$0xff] %v3238_v28 }
  0xc4   :  { %v2456_v36 = vpop.f32.mrf.mxu0 }
  0xc6   :  { %v327_v37 = vpop.f32.mrf.mxu0 }
  0xc8   :  { %v2459_v38 = vpop.f32.mrf.mxu0 }
  0xca   :  { %v337_v39 = vpop.f32.mrf.mxu0 }
  0xcc   :  { %v2462_v40 = vpop.f32.mrf.mxu0 }
  0xce   :  { %v347_v41 = vpop.f32.mrf.mxu0 }
  0xd0   :  { %v2465_v42 = vpop.f32.mrf.mxu0 }
  0xd2   :  { %v357_v43 = vpop.f32.mrf.mxu0 }
  0xd4   :  { %v2468_v44 = vpop.f32.mrf.mxu0 }
  0xd6   :  { %v367_v45 = vpop.f32.mrf.mxu0 }
  0xd8   :  { %v2471_v46 = vpop.f32.mrf.mxu0 }
  0xda   :  { %v377_v47 = vpop.f32.mrf.mxu0 }
  0xdc   :  { %v2474_v48 = vpop.f32.mrf.mxu0 }
  0xde   :  { %v387_v49 = vpop.f32.mrf.mxu0 }
  0xe0   :  { %v2477_v50 = vpop.f32.mrf.mxu0 }
  0xe1   :  { %494 = vmatpush1.msra.mxu1 %v2477_v50 }
  0xe2   :  { %v397_v51 = vpop.f32.mrf.mxu0  ;;  %495 = vmatprep.subr.mxu1 %v4146_v33 }
  0xe3   :  { %496 = vmatpush1.msra.mxu1 %v397_v51  ;;  %v47_v51 = vld [vmem:[%s4139_s0 + $0x80] sm:$0xff] }
  0xe4   :  { %v2991_v52 = vpop.f32.mrf.mxu0  ;;  %497 = vmatprep.subr.mxu1 %v4146_v33 }
  0xe5   :  { %498 = vmatpush1.msra.mxu1 %v2474_v48  ;;  %v46_v48 = vld [vmem:[%s4139_s0 + $0x78] sm:$0xff] }
  0xe6   :  { %v2994_v53 = vpop.f32.mrf.mxu0  ;;  %499 = vmatprep.subr.mxu1 %v4146_v33  ;;  %v3160_v50 = vunpack.c.h.bf16 %v46_v48 }
  0xe7   :  { %500 = vmatpush1.msra.mxu1 %v387_v49 }
  0xe8   :  { %v2483_v54 = vpop.f32.mrf.mxu0  ;;  %501 = vmatprep.subr.mxu1 %v4146_v33 }
  0xe9   :  { %502 = vmatpush1.msra.mxu1 %v2471_v46 }
  0xea   :  { %v417_v55 = vpop.f32.mrf.mxu0  ;;  %503 = vmatprep.subr.mxu1 %v4146_v33 }
  0xeb   :  { %504 = vmatpush1.msra.mxu1 %v377_v47 }
  0xec   :  { %v2486_v56 = vpop.f32.mrf.mxu0  ;;  %505 = vmatprep.subr.mxu1 %v4146_v33 }
  0xed   :  { %506 = vmatpush1.msra.mxu1 %v2468_v44 }
  0xee   :  { %v427_v57 = vpop.f32.mrf.mxu0  ;;  %507 = vmatprep.subr.mxu1 %v4146_v33 }
  0xef   :  { %508 = vmatpush1.msra.mxu1 %v367_v45  ;;  %v45_v45 = vld [vmem:[%s4139_s0 + $0x70] sm:$0xff] }
  0xf0   :  { %v2489_v58 = vpop.f32.mrf.mxu0  ;;  %509 = vmatprep.subr.mxu1 %v4146_v33  ;;  %v3151_v47 = vunpack.c.h.bf16 %v45_v45  ;;  %v3157_v49 = vunpack.c.l.bf16 %v45_v45 }
  0xf1   :  { %510 = vmatpush1.msra.mxu1 %v2465_v42  ;;  %v44_v42 = vld [vmem:[%s4139_s0 + $0x68] sm:$0xff] }
  0xf2   :  { %v437_v59 = vpop.f32.mrf.mxu0  ;;  %511 = vmatprep.subr.mxu1 %v4146_v33  ;;  %v3142_v44 = vunpack.c.h.bf16 %v44_v42  ;;  %v3148_v46 = vunpack.c.l.bf16 %v44_v42  ;;  %v56_v42 = vld [vmem:[%s4139_s0 + $0xc8] sm:$0xff] }
  0xf3   :  { %512 = vmatpush1.msra.mxu1 %v357_v43 }
  0xf4   :  { %v2492_v60 = vpop.f32.mrf.mxu0  ;;  %513 = vmatprep.subr.mxu1 %v4146_v33 }
  0xf5   :  { %514 = vmatpush1.msra.mxu1 %v2462_v40 }
  0xf6   :  { %v447_v61 = vpop.f32.mrf.mxu0  ;;  %515 = vmatprep.subr.mxu1 %v4146_v33 }
  0xf7   :  { %516 = vmatpush1.msra.mxu1 %v347_v41 }
  0xf8   :  { %v2495_v62 = vpop.f32.mrf.mxu0  ;;  %517 = vmatprep.subr.mxu1 %v4146_v33 }
  0xf9   :  { %518 = vmatpush1.msra.mxu1 %v2459_v38 }
  0xfa   :  { %v457_v63 = vpop.f32.mrf.mxu0  ;;  %519 = vmatprep.subr.mxu1 %v4146_v33 }
  0xfb   :  { %520 = vmatpush1.msra.mxu1 %v337_v39  ;;  %v43_v39 = vld [vmem:[%s4139_s0 + $0x60] sm:$0xff] }
  0xfc   :  { %v2498_v0 = vpop.f32.mrf.mxu0  ;;  %521 = vmatprep.subr.mxu1 %v4146_v33  ;;  %v3133_v41 = vunpack.c.h.bf16 %v43_v39  ;;  %v3139_v43 = vunpack.c.l.bf16 %v43_v39 }
  0xfd   :  { %522 = vmatpush1.msra.mxu1 %v2456_v36  ;;  %v42_v36 = vld [vmem:[%s4139_s0 + $0x58] sm:$0xff] }
  0xfe   :  { %v467_v1 = vpop.f32.mrf.mxu0  ;;  %523 = vmatprep.subr.mxu1 %v4146_v33  ;;  %v3124_v38 = vunpack.c.h.bf16 %v42_v36  ;;  %v3130_v40 = vunpack.c.l.bf16 %v42_v36  ;;  %v3245_v36 = vunpack.c.l.bf16 %v54_v19  ;;  %v3284_v19 = vunpack.c.h.bf16 %v59_v7 }
  0xff   :  { %524 = vmatpush1.msra.mxu1 %v327_v37  ;;  %v3121_v37 = vunpack.c.l.bf16 %v41_v31  ;;  %v55_v31 = vld [vmem:[%s4139_s0 + $0xc0] sm:$0xff] }
 0x100   :  { %v2501_v2 = vpop.f32.mrf.mxu0  ;;  %525 = vmatprep.subr.mxu1 %v4146_v33  ;;  %4185 = vst [vmem:[#allocation4_spill] sm:$0xff] %v3245_v36  ;;  %v3248_v39 = vunpack.c.h.bf16 %v55_v31  ;;  %v3254_v45 = vunpack.c.l.bf16 %v55_v31  ;;  %4194 = vst [vmem:[#allocation13_spill] sm:$0xff] %v3284_v19  ;;  %v3290_v31 = vunpack.c.l.bf16 %v59_v7  ;;  %v62_v7 = vld [vmem:[%s4139_s0 + $0xf8] sm:$0xff] }
 0x101   :  { %526 = vmatpush2.msra.mxu1 %v2501_v2  ;;  %v52_v2 = vld [vmem:[%s4139_s0 + $0xa8] sm:$0xff] }
 0x102   :  { %v477_v3 = vpop.f32.mrf.mxu0  ;;  %527 = vmatprep.subr.mxu1 %v4146_v33  ;;  %v3214_v4 = vunpack.c.h.bf16 %v52_v2  ;;  %v3220_v10 = vunpack.c.l.bf16 %v52_v2  ;;  %4186 = vst [vmem:[#allocation5_spill] sm:$0xff] %v3248_v39  ;;  %4187 = vst [vmem:[#allocation6_spill] sm:$0xff] %v3254_v45 }
 0x103   :  { %528 = vmatpush2.msra.mxu1 %v477_v3  ;;  %4195 = vst [vmem:[#allocation14_spill] sm:$0xff] %v3290_v31 }
 0x104   :  { %529 = vmatprep.subr.mxu1 %v4146_v33 }
 0x105   :  { %530 = vmatpush2.msra.mxu1 %v2498_v0 }
 0x106   :  { %531 = vmatprep.subr.mxu1 %v4146_v33 }
 0x107   :  { %532 = vmatpush2.msra.mxu1 %v467_v1 }
 0x108   :  { %533 = vmatprep.subr.mxu1 %v4146_v33 }
 0x109   :  { %534 = vmatpush2.msra.mxu1 %v2495_v62 }
 0x10a   :  { %535 = vmatprep.subr.mxu1 %v4146_v33 }
 0x10b   :  { %536 = vmatpush2.msra.mxu1 %v457_v63  ;;  %v51_v63 = vld [vmem:[%s4139_s0 + $0xa0] sm:$0xff] }
 0x10c   :  { %537 = vmatprep.subr.mxu1 %v4146_v33  ;;  %v3205_v1 = vunpack.c.h.bf16 %v51_v63  ;;  %v3211_v3 = vunpack.c.l.bf16 %v51_v63 }
 0x10d   :  { %538 = vmatpush2.msra.mxu1 %v2492_v60  ;;  %v50_v60 = vld [vmem:[%s4139_s0 + $0x98] sm:$0xff] }
 0x10e   :  { %539 = vmatprep.subr.mxu1 %v4146_v33  ;;  %v3196_v62 = vunpack.c.h.bf16 %v50_v60  ;;  %v3202_v0 = vunpack.c.l.bf16 %v50_v60  ;;  %v58_v60 = vld [vmem:[%s4139_s0 + $0xd8] sm:$0xff] }
 0x10f   :  { %540 = vmatpush2.msra.mxu1 %v447_v61  ;;  %v3275_v2 = vunpack.c.h.bf16 %v58_v60  ;;  %v3281_v13 = vunpack.c.l.bf16 %v58_v60  ;;  %v3299_v60 = vunpack.c.l.bf16 %v60_v22 }
 0x110   :  { %541 = vmatprep.subr.mxu1 %v4146_v33 }
 0x111   :  { %542 = vmatpush2.msra.mxu1 %v2489_v58  ;;  %4192 = vst [vmem:[#allocation11_spill] sm:$0xff] %v3275_v2  ;;  %4193 = vst [vmem:[#allocation12_spill] sm:$0xff] %v3281_v13 }
 0x112   :  { %543 = vmatprep.subr.mxu1 %v4146_v33  ;;  %4197 = vst [vmem:[#allocation16_spill] sm:$0xff] %v3299_v60 }
 0x113   :  { %544 = vmatpush2.msra.mxu1 %v437_v59 }
 0x114   :  { %545 = vmatprep.subr.mxu1 %v4146_v33 }
 0x115   :  { %546 = vmatpush2.msra.mxu1 %v2486_v56 }
 0x116   :  { %547 = vmatprep.subr.mxu1 %v4146_v33 }
 0x117   :  { %548 = vmatpush2.msra.mxu1 %v427_v57  ;;  %v49_v57 = vld [vmem:[%s4139_s0 + $0x90] sm:$0xff] }
 0x118   :  { %549 = vmatprep.subr.mxu1 %v4146_v33  ;;  %v3187_v59 = vunpack.c.h.bf16 %v49_v57  ;;  %v3193_v61 = vunpack.c.l.bf16 %v49_v57 }
 0x119   :  { %550 = vmatpush2.msra.mxu1 %v2483_v54  ;;  %v48_v54 = vld [vmem:[%s4139_s0 + $0x88] sm:$0xff] }
 0x11a   :  { %551 = vmatprep.subr.mxu1 %v4146_v33  ;;  %v3178_v56 = vunpack.c.h.bf16 %v48_v54  ;;  %v3184_v58 = vunpack.c.l.bf16 %v48_v54  ;;  %v3263_v54 = vunpack.c.l.bf16 %v56_v42 }
 0x11b   :  { %552 = vmatpush2.msra.mxu1 %v417_v55  ;;  %v3175_v55 = vunpack.c.l.bf16 %v47_v51 }
 0x11c   :  { %553 = vmatprep.subr.mxu1 %v4146_v33  ;;  %4189 = vst [vmem:[#allocation8_spill] sm:$0xff] %v3263_v54 }
 0x11d   :  { %554 = vmatpush2.msra.mxu1 %v2991_v52  ;;  %v3166_v52 = vunpack.c.l.bf16 %v46_v48  ;;  %v3257_v48 = vunpack.c.h.bf16 %v56_v42  ;;  %v3293_v42 = vunpack.c.h.bf16 %v60_v22  ;;  %v3314_v22 = vunpack.c.l.bf16 %v62_v7 }
 0x11e   :  { %555 = vmatprep.subr.mxu1 %v4146_v33 }
 0x11f   :  { %556 = vmatpush2.msra.mxu1 %v2994_v53  ;;  %v3169_v53 = vunpack.c.h.bf16 %v47_v51  ;;  %4188 = vst [vmem:[#allocation7_spill] sm:$0xff] %v3257_v48  ;;  %v57_v51 = vld [vmem:[%s4139_s0 + $0xd0] sm:$0xff]  ;;  %4196 = vst [vmem:[#allocation15_spill] sm:$0xff] %v3293_v42 }
 0x120   :  { %558 = vmatmul.mubr.f32.vlgmr.msra.gmra.mxu1 %v3028_v5  ;;  %1829 = vmatprep.subr.mxu1 %v4146_v33  ;;  %v3266_v57 = vunpack.c.h.bf16 %v57_v51  ;;  %v3272_v63 = vunpack.c.l.bf16 %v57_v51  ;;  %v61_v51 = vld [vmem:[%s4139_s0 + $0xf0] sm:$0xff]  ;;  %4201 = vst [vmem:[#allocation20_spill] sm:$0xff] %v3314_v22 }
 0x121   :  { %562 = vmatprep.mubr.f32.mxu1 %v3031_v6  ;;  %v3302_v33 = vunpack.c.h.bf16 %v61_v51 }
 0x122   :  { %4190 = vst [vmem:[#allocation9_spill] sm:$0xff] %v3266_v57  ;;  %4191 = vst [vmem:[#allocation10_spill] sm:$0xff] %v3272_v63 }
 0x123   :  { %4198 = vst [vmem:[#allocation17_spill] sm:$0xff] %v3302_v33 }
 0x124   :  { %563 = vmatmul.mubr.f32.gmra.mxu1 %v3039_v8 }
 0x125   :  { %567 = vmatprep.mubr.f32.mxu1 %v3043_v9 }
 0x128   :  { %568 = vmatmul.mubr.f32.gmra.mxu1 %v3049_v11 }
 0x129   :  { %572 = vmatprep.mubr.f32.mxu1 %v3052_v12 }
 0x12c   :  { %573 = vmatmul.mubr.f32.gmra.mxu1 %v3058_v14 }
 0x12d   :  { %577 = vmatprep.mubr.f32.mxu1 %v3061_v15 }
 0x130   :  { %578 = vmatmul.mubr.f32.gmra.mxu1 %v3067_v17 }
 0x131   :  { %582 = vmatprep.mubr.f32.mxu1 %v3070_v18 }
 0x134   :  { %583 = vmatmul.mubr.f32.gmra.mxu1 %v3076_v20 }
 0x135   :  { %587 = vmatprep.mubr.f32.mxu1 %v3079_v21 }
 0x138   :  { %588 = vmatmul.mubr.f32.gmra.mxu1 %v3085_v23 }
 0x139   :  { %592 = vmatprep.mubr.f32.mxu1 %v3088_v24 }
 0x13c   :  { %593 = vmatmul.mubr.f32.gmra.mxu1 %v3094_v26 }
 0x13d   :  { %597 = vmatprep.mubr.f32.mxu1 %v3097_v27 }
 0x140   :  { %598 = vmatmul.mubr.f32.gmra.mxu1 %v3103_v29 }
 0x141   :  { %602 = vmatprep.mubr.f32.mxu1 %v3106_v30 }
 0x144   :  { %603 = vmatmul.mubr.f32.gmra.mxu1 %v3112_v32 }
 0x145   :  { %607 = vmatprep.mubr.f32.mxu1 %v3115_v34 }
 0x148   :  { %608 = vmatmul.mubr.f32.gmra.mxu1 %v3121_v37 }
 0x149   :  { %612 = vmatprep.mubr.f32.mxu1 %v3124_v38 }
 0x14c   :  { %613 = vmatmul.mubr.f32.gmra.mxu1 %v3130_v40 }
 0x14d   :  { %617 = vmatprep.mubr.f32.mxu1 %v3133_v41 }
 0x150   :  { %618 = vmatmul.mubr.f32.gmra.mxu1 %v3139_v43 }
 0x151   :  { %622 = vmatprep.mubr.f32.mxu1 %v3142_v44 }
 0x154   :  { %623 = vmatmul.mubr.f32.gmra.mxu1 %v3148_v46 }
 0x155   :  { %627 = vmatprep.mubr.f32.mxu1 %v3151_v47 }
 0x158   :  { %628 = vmatmul.mubr.f32.gmra.mxu1 %v3157_v49 }
 0x159   :  { %632 = vmatprep.mubr.f32.mxu1 %v3160_v50 }
 0x15c   :  { %633 = vmatmul.mubr.f32.gmra.mxu1 %v3166_v52 }
 0x15d   :  { %637 = vmatprep.mubr.f32.mxu1 %v3169_v53 }
 0x160   :  { %638 = vmatmul.mubr.f32.gmra.mxu1 %v3175_v55 }
 0x161   :  { %642 = vmatprep.mubr.f32.mxu1 %v3178_v56 }
 0x164   :  { %643 = vmatmul.mubr.f32.gmra.mxu1 %v3184_v58 }
 0x165   :  { %647 = vmatprep.mubr.f32.mxu1 %v3187_v59 }
 0x168   :  { %648 = vmatmul.mubr.f32.gmra.mxu1 %v3193_v61 }
 0x169   :  { %652 = vmatprep.mubr.f32.mxu1 %v3196_v62 }
 0x16c   :  { %653 = vmatmul.mubr.f32.gmra.mxu1 %v3202_v0 }
 0x16d   :  { %657 = vmatprep.mubr.f32.mxu1 %v3205_v1 }
 0x170   :  { %658 = vmatmul.mubr.f32.gmra.mxu1 %v3211_v3 }
 0x171   :  { %662 = vmatprep.mubr.f32.mxu1 %v3214_v4 }
 0x174   :  { %663 = vmatmul.mubr.f32.gmra.mxu1 %v3220_v10 }
 0x175   :  { %667 = vmatprep.mubr.f32.mxu1 %v3226_v16 }
 0x178   :  { %668 = vmatmul.mubr.f32.gmra.mxu1 %v3235_v25 }
 0x179   :  { %672 = vmatprep.mubr.f32.mxu1 %v3238_v28 }
 0x17c   :  { %673 = vmatmul.mubr.f32.gmra.mxu1 %v3245_v36 }
 0x17d   :  { %677 = vmatprep.mubr.f32.mxu1 %v3248_v39 }
 0x180   :  { %678 = vmatmul.mubr.f32.gmra.mxu1 %v3254_v45 }
 0x181   :  { %682 = vmatprep.mubr.f32.mxu1 %v3257_v48 }
 0x184   :  { %683 = vmatmul.mubr.f32.gmra.mxu1 %v3263_v54 }
 0x185   :  { %687 = vmatprep.mubr.f32.mxu1 %v3266_v57 }
 0x188   :  { %688 = vmatmul.mubr.f32.gmra.mxu1 %v3272_v63 }
 0x189   :  { %692 = vmatprep.mubr.f32.mxu1 %v3275_v2 }
 0x18c   :  { %693 = vmatmul.mubr.f32.gmra.mxu1 %v3281_v13  ;;  %v3311_v13 = vunpack.c.h.bf16 %v62_v7 }
 0x18d   :  { %697 = vmatprep.mubr.f32.mxu1 %v3284_v19  ;;  %v3308_v19 = vunpack.c.l.bf16 %v61_v51 }
 0x18e   :  { %4200 = vst [vmem:[#allocation19_spill] sm:$0xff] %v3311_v13 }
 0x18f   :  { %4199 = vst [vmem:[#allocation18_spill] sm:$0xff] %v3308_v19 }
 0x190   :  { %698 = vmatmul.mubr.f32.gmra.mxu1 %v3290_v31 }
 0x191   :  { %702 = vmatprep.mubr.f32.mxu1 %v3293_v42 }
 0x194   :  { %703 = vmatmul.mubr.f32.gmra.mxu1 %v3299_v60  ;;  %v3322_v60 = vld [vmem:[%s4141_s3] ss:$0 sm:$0xff] }
 0x195   :  { %707 = vmatprep.mubr.f32.mxu1 %v3302_v33 }
 0x198   :  { %708 = vmatmul.mubr.f32.gmra.mxu1 %v3308_v19 }
 0x199   :  { %712 = vmatprep.mubr.f32.mxu1 %v3311_v13 }
 0x19c   :  { %713 = vmatmul.mubr.f32.gmra.mxu1 %v3314_v22 }
 0x19d   :  { %1893 = vmatprep.mubr.f32.mxu1 %v2987_v35 }
 0x1e0   :  { %v559_v51 = vpop.f32.mrf.mxu1 }
 0x1e1   :  { %v560_v33 = vadd.f32 %v3322_v60, %v559_v51 }
 0x1e2   :  { %v561_v42 = vpop.f32.mrf.mxu1 }
 0x1e3   :  { %2609 = vtanh.f32 %v560_v33 }
 0x1e4   :  { %v564_v31 = vpop.f32.mrf.mxu1 }
 0x1e5   :  { %v565_v7 = vadd.f32 %v3322_v60, %v564_v31 }
 0x1e6   :  { %v566_v19 = vpop.f32.mrf.mxu1 }
 0x1e7   :  { %2611 = vtanh.f32 %v565_v7 }
 0x1e8   :  { %v569_v13 = vpop.f32.mrf.mxu1 }
 0x1e9   :  { %v570_v22 = vadd.f32 %v3322_v60, %v569_v13 }
 0x1ea   :  { %v571_v2 = vpop.f32.mrf.mxu1 }
 0x1eb   :  { %2613 = vtanh.f32 %v570_v22 }
 0x1ec   :  { %v574_v63 = vpop.f32.mrf.mxu1 }
 0x1ed   :  { %v575_v57 = vadd.f32 %v3322_v60, %v574_v63 }
 0x1ee   :  { %v576_v54 = vpop.f32.mrf.mxu1 }
 0x1ef   :  { %2615 = vtanh.f32 %v575_v57 }
 0x1f0   :  { %v2610_v48 = vpop.eup %2609  ;;  %v579_v51 = vpop.f32.mrf.mxu1 }
 0x1f1   :  { %v580_v33 = vadd.f32 %v3322_v60, %v579_v51  ;;  %2506 = vmatprep.mubr.msk.f32.mxu0 %vm750_vm2, %v2610_v48  ;;  %751 = vst.msk [vmem:[%s4142_s8] sm:$0xff] %vm750_vm2, %v2610_v48 }
 0x1f2   :  { %v581_v13 = vpop.f32.mrf.mxu1 }
 0x1f3   :  { %2617 = vtanh.f32 %v580_v33 }
 0x1f4   :  { %v2612_v2 = vpop.eup %2611  ;;  %v584_v19 = vpop.f32.mrf.mxu1 }
 0x1f5   :  { %v585_v63 = vadd.f32 %v3322_v60, %v584_v19  ;;  %2507 = vmatmul.mubr.msk.f32.vlgmr.msra.gmra.mxu0 %vm750_vm2, %v2612_v2  ;;  %752 = vst.msk [vmem:[%s4142_s8 + $0x8] sm:$0xff] %vm750_vm2, %v2612_v2 }
 0x1f6   :  { %v586_v54 = vpop.f32.mrf.mxu1 }
 0x1f7   :  { %2619 = vtanh.f32 %v585_v63 }
 0x1f8   :  { %v2614_v57 = vpop.eup %2613  ;;  %v589_v31 = vpop.f32.mrf.mxu1 }
 0x1f9   :  { %v590_v42 = vadd.f32 %v3322_v60, %v589_v31  ;;  %2509 = vmatprep.mubr.msk.f32.mxu0 %vm750_vm2, %v2614_v57  ;;  %753 = vst.msk [vmem:[%s4142_s8 + $0x10] sm:$0xff] %vm750_vm2, %v2614_v57 }
 0x1fa   :  { %v591_v48 = vpop.f32.mrf.mxu1 }
 0x1fb   :  { %2621 = vtanh.f32 %v590_v42 }
 0x1fc   :  { %v2616_v22 = vpop.eup %2615  ;;  %v594_v7 = vpop.f32.mrf.mxu1 }
 0x1fd   :  { %v595_v51 = vadd.f32 %v3322_v60, %v594_v7  ;;  %2510 = vmatmul.mubr.msk.f32.gmra.mxu0 %vm750_vm2, %v2616_v22  ;;  %754 = vst.msk [vmem:[%s4142_s8 + $0x18] sm:$0xff] %vm750_vm2, %v2616_v22 }
 0x1fe   :  { %v596_v33 = vpop.f32.mrf.mxu1 }
 0x1ff   :  { %2623 = vtanh.f32 %v595_v51 }
 0x200   :  { %v2618_v13 = vpop.eup %2617  ;;  %v599_v2 = vpop.f32.mrf.mxu1 }
 0x201   :  { %v600_v19 = vadd.f32 %v3322_v60, %v599_v2  ;;  %2512 = vmatprep.mubr.msk.f32.mxu0 %vm750_vm2, %v2618_v13  ;;  %755 = vst.msk [vmem:[%s4142_s8 + $0x20] sm:$0xff] %vm750_vm2, %v2618_v13 }
 0x202   :  { %v601_v63 = vpop.f32.mrf.mxu1 }
 0x203   :  { %2625 = vtanh.f32 %v600_v19 }
 0x204   :  { %v2620_v54 = vpop.eup %2619  ;;  %v604_v57 = vpop.f32.mrf.mxu1 }
 0x205   :  { %v605_v31 = vadd.f32 %v3322_v60, %v604_v57  ;;  %2513 = vmatmul.mubr.msk.f32.gmra.mxu0 %vm750_vm2, %v2620_v54  ;;  %756 = vst.msk [vmem:[%s4142_s8 + $0x28] sm:$0xff] %vm750_vm2, %v2620_v54 }
 0x206   :  { %v606_v42 = vpop.f32.mrf.mxu1 }
 0x207   :  { %2627 = vtanh.f32 %v605_v31 }
 0x208   :  { %v2622_v48 = vpop.eup %2621  ;;  %v609_v22 = vpop.f32.mrf.mxu1 }
 0x209   :  { %v610_v7 = vadd.f32 %v3322_v60, %v609_v22  ;;  %2515 = vmatprep.mubr.msk.f32.mxu0 %vm750_vm2, %v2622_v48  ;;  %757 = vst.msk [vmem:[%s4142_s8 + $0x30] sm:$0xff] %vm750_vm2, %v2622_v48 }
 0x20a   :  { %v611_v51 = vpop.f32.mrf.mxu1 }
 0x20b   :  { %2629 = vtanh.f32 %v610_v7 }
 0x20c   :  { %v2624_v33 = vpop.eup %2623  ;;  %v614_v13 = vpop.f32.mrf.mxu1 }
 0x20d   :  { %v615_v2 = vadd.f32 %v3322_v60, %v614_v13  ;;  %2516 = vmatmul.mubr.msk.f32.gmra.mxu0 %vm750_vm2, %v2624_v33  ;;  %758 = vst.msk [vmem:[%s4142_s8 + $0x38] sm:$0xff] %vm750_vm2, %v2624_v33 }
 0x20e   :  { %v616_v19 = vpop.f32.mrf.mxu1 }
 0x20f   :  { %2631 = vtanh.f32 %v615_v2 }
 0x210   :  { %v2626_v63 = vpop.eup %2625  ;;  %v619_v54 = vpop.f32.mrf.mxu1 }
 0x211   :  { %v620_v57 = vadd.f32 %v3322_v60, %v619_v54  ;;  %2518 = vmatprep.mubr.msk.f32.mxu0 %vm750_vm2, %v2626_v63  ;;  %759 = vst.msk [vmem:[%s4142_s8 + $0x40] sm:$0xff] %vm750_vm2, %v2626_v63 }
 0x212   :  { %v621_v31 = vpop.f32.mrf.mxu1 }
 0x213   :  { %2633 = vtanh.f32 %v620_v57 }
 0x214   :  { %v2628_v42 = vpop.eup %2627  ;;  %v624_v48 = vpop.f32.mrf.mxu1 }
 0x215   :  { %v625_v22 = vadd.f32 %v3322_v60, %v624_v48  ;;  %2519 = vmatmul.mubr.msk.f32.gmra.mxu0 %vm750_vm2, %v2628_v42  ;;  %760 = vst.msk [vmem:[%s4142_s8 + $0x48] sm:$0xff] %vm750_vm2, %v2628_v42 }
 0x216   :  { %v626_v7 = vpop.f32.mrf.mxu1 }
 0x217   :  { %2635 = vtanh.f32 %v625_v22 }
 0x218   :  { %v2630_v51 = vpop.eup %2629  ;;  %v629_v33 = vpop.f32.mrf.mxu1 }
 0x219   :  { %v630_v13 = vadd.f32 %v3322_v60, %v629_v33  ;;  %2521 = vmatprep.mubr.msk.f32.mxu0 %vm750_vm2, %v2630_v51  ;;  %761 = vst.msk [vmem:[%s4142_s8 + $0x50] sm:$0xff] %vm750_vm2, %v2630_v51 }
 0x21a   :  { %v631_v2 = vpop.f32.mrf.mxu1 }
 0x21b   :  { %2637 = vtanh.f32 %v630_v13 }
 0x21c   :  { %v2632_v19 = vpop.eup %2631  ;;  %v634_v63 = vpop.f32.mrf.mxu1 }
 0x21d   :  { %v635_v54 = vadd.f32 %v3322_v60, %v634_v63  ;;  %2522 = vmatmul.mubr.msk.f32.gmra.mxu0 %vm750_vm2, %v2632_v19  ;;  %762 = vst.msk [vmem:[%s4142_s8 + $0x58] sm:$0xff] %vm750_vm2, %v2632_v19 }
 0x21e   :  { %v636_v57 = vpop.f32.mrf.mxu1 }
 0x21f   :  { %2639 = vtanh.f32 %v635_v54 }
 0x220   :  { %v2634_v31 = vpop.eup %2633  ;;  %v639_v42 = vpop.f32.mrf.mxu1 }
 0x221   :  { %v640_v48 = vadd.f32 %v3322_v60, %v639_v42  ;;  %2524 = vmatprep.mubr.msk.f32.mxu0 %vm750_vm2, %v2634_v31  ;;  %763 = vst.msk [vmem:[%s4142_s8 + $0x60] sm:$0xff] %vm750_vm2, %v2634_v31 }
 0x222   :  { %v641_v22 = vpop.f32.mrf.mxu1 }
 0x223   :  { %2641 = vtanh.f32 %v640_v48 }
 0x224   :  { %v2636_v7 = vpop.eup %2635  ;;  %v644_v51 = vpop.f32.mrf.mxu1 }
 0x225   :  { %v645_v33 = vadd.f32 %v3322_v60, %v644_v51  ;;  %2525 = vmatmul.mubr.msk.f32.gmra.mxu0 %vm750_vm2, %v2636_v7  ;;  %764 = vst.msk [vmem:[%s4142_s8 + $0x68] sm:$0xff] %vm750_vm2, %v2636_v7 }
 0x226   :  { %v646_v13 = vpop.f32.mrf.mxu1 }
 0x227   :  { %2643 = vtanh.f32 %v645_v33 }
 0x228   :  { %v2638_v2 = vpop.eup %2637  ;;  %v649_v19 = vpop.f32.mrf.mxu1 }
 0x229   :  { %v650_v63 = vadd.f32 %v3322_v60, %v649_v19  ;;  %2527 = vmatprep.mubr.msk.f32.mxu0 %vm750_vm2, %v2638_v2  ;;  %765 = vst.msk [vmem:[%s4142_s8 + $0x70] sm:$0xff] %vm750_vm2, %v2638_v2 }
 0x22a   :  { %v651_v54 = vpop.f32.mrf.mxu1 }
 0x22b   :  { %2645 = vtanh.f32 %v650_v63 }
 0x22c   :  { %v2640_v57 = vpop.eup %2639  ;;  %v654_v31 = vpop.f32.mrf.mxu1 }
 0x22d   :  { %v655_v42 = vadd.f32 %v3322_v60, %v654_v31  ;;  %2528 = vmatmul.mubr.msk.f32.gmra.mxu0 %vm750_vm2, %v2640_v57  ;;  %766 = vst.msk [vmem:[%s4142_s8 + $0x78] sm:$0xff] %vm750_vm2, %v2640_v57 }
 0x22e   :  { %v656_v48 = vpop.f32.mrf.mxu1 }
 0x22f   :  { %2647 = vtanh.f32 %v655_v42 }
 0x230   :  { %v2642_v22 = vpop.eup %2641  ;;  %v659_v7 = vpop.f32.mrf.mxu1 }
 0x231   :  { %v660_v51 = vadd.f32 %v3322_v60, %v659_v7  ;;  %2530 = vmatprep.mubr.msk.f32.mxu0 %vm750_vm2, %v2642_v22  ;;  %767 = vst.msk [vmem:[%s4142_s8 + $0x80] sm:$0xff] %vm750_vm2, %v2642_v22 }
 0x232   :  { %v661_v33 = vpop.f32.mrf.mxu1 }
 0x233   :  { %2649 = vtanh.f32 %v660_v51 }
 0x234   :  { %v2644_v13 = vpop.eup %2643  ;;  %v664_v2 = vpop.f32.mrf.mxu1 }
 0x235   :  { %v665_v19 = vadd.f32 %v3322_v60, %v664_v2  ;;  %2531 = vmatmul.mubr.msk.f32.gmra.mxu0 %vm750_vm2, %v2644_v13  ;;  %768 = vst.msk [vmem:[%s4142_s8 + $0x88] sm:$0xff] %vm750_vm2, %v2644_v13 }
 0x236   :  { %v666_v63 = vpop.f32.mrf.mxu1 }
 0x237   :  { %2651 = vtanh.f32 %v665_v19 }
 0x238   :  { %v2646_v54 = vpop.eup %2645  ;;  %v669_v57 = vpop.f32.mrf.mxu1 }
 0x239   :  { %v670_v31 = vadd.f32 %v3322_v60, %v669_v57  ;;  %2533 = vmatprep.mubr.msk.f32.mxu0 %vm750_vm2, %v2646_v54  ;;  %769 = vst.msk [vmem:[%s4142_s8 + $0x90] sm:$0xff] %vm750_vm2, %v2646_v54 }
 0x23a   :  { %v671_v42 = vpop.f32.mrf.mxu1 }
 0x23b   :  { %2653 = vtanh.f32 %v670_v31 }
 0x23c   :  { %v2648_v48 = vpop.eup %2647  ;;  %v674_v22 = vpop.f32.mrf.mxu1 }
 0x23d   :  { %v675_v7 = vadd.f32 %v3322_v60, %v674_v22  ;;  %2534 = vmatmul.mubr.msk.f32.gmra.mxu0 %vm750_vm2, %v2648_v48  ;;  %770 = vst.msk [vmem:[%s4142_s8 + $0x98] sm:$0xff] %vm750_vm2, %v2648_v48 }
 0x23e   :  { %v676_v51 = vpop.f32.mrf.mxu1 }
 0x23f   :  { %2655 = vtanh.f32 %v675_v7 }
 0x240   :  { %v2650_v33 = vpop.eup %2649  ;;  %v679_v13 = vpop.f32.mrf.mxu1 }
 0x241   :  { %v680_v2 = vadd.f32 %v3322_v60, %v679_v13  ;;  %2536 = vmatprep.mubr.msk.f32.mxu0 %vm750_vm2, %v2650_v33  ;;  %771 = vst.msk [vmem:[%s4142_s8 + $0xa0] sm:$0xff] %vm750_vm2, %v2650_v33 }
 0x242   :  { %v681_v19 = vpop.f32.mrf.mxu1 }
 0x243   :  { %2657 = vtanh.f32 %v680_v2 }
 0x244   :  { %v2652_v63 = vpop.eup %2651  ;;  %v684_v54 = vpop.f32.mrf.mxu1 }
 0x245   :  { %v685_v57 = vadd.f32 %v3322_v60, %v684_v54  ;;  %2537 = vmatmul.mubr.msk.f32.gmra.mxu0 %vm750_vm2, %v2652_v63  ;;  %772 = vst.msk [vmem:[%s4142_s8 + $0xa8] sm:$0xff] %vm750_vm2, %v2652_v63 }
 0x246   :  { %v686_v31 = vpop.f32.mrf.mxu1 }
 0x247   :  { %2659 = vtanh.f32 %v685_v57 }
 0x248   :  { %v2654_v42 = vpop.eup %2653  ;;  %v689_v48 = vpop.f32.mrf.mxu1 }
 0x249   :  { %v690_v22 = vadd.f32 %v3322_v60, %v689_v48  ;;  %2539 = vmatprep.mubr.msk.f32.mxu0 %vm750_vm2, %v2654_v42  ;;  %773 = vst.msk [vmem:[%s4142_s8 + $0xb0] sm:$0xff] %vm750_vm2, %v2654_v42 }
 0x24a   :  { %v691_v7 = vpop.f32.mrf.mxu1 }
 0x24b   :  { %2661 = vtanh.f32 %v690_v22 }
 0x24c   :  { %v2656_v51 = vpop.eup %2655  ;;  %v694_v33 = vpop.f32.mrf.mxu1 }
 0x24d   :  { %v695_v13 = vadd.f32 %v3322_v60, %v694_v33  ;;  %2540 = vmatmul.mubr.msk.f32.gmra.mxu0 %vm750_vm2, %v2656_v51  ;;  %774 = vst.msk [vmem:[%s4142_s8 + $0xb8] sm:$0xff] %vm750_vm2, %v2656_v51 }
 0x24e   :  { %v696_v2 = vpop.f32.mrf.mxu1 }
 0x24f   :  { %2663 = vtanh.f32 %v695_v13 }
 0x250   :  { %v2658_v19 = vpop.eup %2657  ;;  %v699_v63 = vpop.f32.mrf.mxu1 }
 0x251   :  { %v700_v54 = vadd.f32 %v3322_v60, %v699_v63  ;;  %2542 = vmatprep.mubr.msk.f32.mxu0 %vm750_vm2, %v2658_v19  ;;  %775 = vst.msk [vmem:[%s4142_s8 + $0xc0] sm:$0xff] %vm750_vm2, %v2658_v19 }
 0x252   :  { %v701_v57 = vpop.f32.mrf.mxu1 }
 0x253   :  { %2665 = vtanh.f32 %v700_v54 }
 0x254   :  { %v2660_v31 = vpop.eup %2659  ;;  %v704_v42 = vpop.f32.mrf.mxu1 }
 0x255   :  { %v705_v48 = vadd.f32 %v3322_v60, %v704_v42  ;;  %2543 = vmatmul.mubr.msk.f32.gmra.mxu0 %vm750_vm2, %v2660_v31  ;;  %776 = vst.msk [vmem:[%s4142_s8 + $0xc8] sm:$0xff] %vm750_vm2, %v2660_v31 }
 0x256   :  { %v706_v22 = vpop.f32.mrf.mxu1 }
 0x257   :  { %2667 = vtanh.f32 %v705_v48 }
 0x258   :  { %v2662_v7 = vpop.eup %2661  ;;  %v709_v51 = vpop.f32.mrf.mxu1 }
 0x259   :  { %v710_v33 = vadd.f32 %v3322_v60, %v709_v51  ;;  %2545 = vmatprep.mubr.msk.f32.mxu0 %vm750_vm2, %v2662_v7  ;;  %777 = vst.msk [vmem:[%s4142_s8 + $0xd0] sm:$0xff] %vm750_vm2, %v2662_v7 }
 0x25a   :  { %v711_v13 = vpop.f32.mrf.mxu1 }
 0x25b   :  { %2669 = vtanh.f32 %v710_v33 }
 0x25c   :  { %v2664_v2 = vpop.eup %2663  ;;  %v714_v19 = vpop.f32.mrf.mxu1 }
 0x25d   :  { %v715_v63 = vadd.f32 %v3322_v60, %v714_v19  ;;  %2546 = vmatmul.mubr.msk.f32.gmra.mxu0 %vm750_vm2, %v2664_v2  ;;  %778 = vst.msk [vmem:[%s4142_s8 + $0xd8] sm:$0xff] %vm750_vm2, %v2664_v2 }
 0x25e   :  { %v716_v54 = vpop.f32.mrf.mxu1 }
 0x25f   :  { %2671 = vtanh.f32 %v715_v63 }
 0x260   :  { %v2666_v57 = vpop.eup %2665 }
 0x261   :  { %2548 = vmatprep.mubr.msk.f32.mxu0 %vm750_vm2, %v2666_v57  ;;  %779 = vst.msk [vmem:[%s4142_s8 + $0xe0] sm:$0xff] %vm750_vm2, %v2666_v57 }
 0x264   :  { %v2668_v31 = vpop.eup %2667 }
 0x265   :  { %2549 = vmatmul.mubr.msk.f32.gmra.mxu0 %vm750_vm2, %v2668_v31  ;;  %780 = vst.msk [vmem:[%s4142_s8 + $0xe8] sm:$0xff] %vm750_vm2, %v2668_v31 }
 0x268   :  { %v2670_v60 = vpop.eup %2669 }
 0x269   :  { %2551 = vmatprep.mubr.msk.f32.mxu0 %vm750_vm2, %v2670_v60  ;;  %781 = vst.msk [vmem:[%s4142_s8 + $0xf0] sm:$0xff] %vm750_vm2, %v2670_v60 }
 0x26c   :  { %v2672_v42 = vpop.eup %2671 }
 0x26d   :  { %2552 = vmatmul.mubr.msk.f32.gmra.mxu0 %vm750_vm2, %v2672_v42  ;;  %782 = vst.msk [vmem:[%s4142_s8 + $0xf8] sm:$0xff] %vm750_vm2, %v2672_v42  ;;  %v4202_v42 = vmov 0.0  }
 0x26e   :  { %1177 = vmatprep.mubr.f32.mxu0 %v2987_v35 }
 0x2b5   :  { %v2508_v48 = vpop.f32.mrf.mxu0 }
 0x2b7   :  { %v947_v22 = vpop.f32.mrf.mxu0 }
 0x2bd   :  { %v2511_v7 = vpop.f32.mrf.mxu0 }
 0x2bf   :  { %v957_v51 = vpop.f32.mrf.mxu0 }
 0x2c5   :  { %v2514_v33 = vpop.f32.mrf.mxu0 }
 0x2c7   :  { %v967_v13 = vpop.f32.mrf.mxu0 }
 0x2cd   :  { %v2517_v2 = vpop.f32.mrf.mxu0 }
 0x2cf   :  { %v977_v19 = vpop.f32.mrf.mxu0 }
 0x2d5   :  { %v2520_v63 = vpop.f32.mrf.mxu0 }
 0x2d7   :  { %v987_v54 = vpop.f32.mrf.mxu0 }
 0x2dd   :  { %v2523_v57 = vpop.f32.mrf.mxu0 }
 0x2df   :  { %v997_v31 = vpop.f32.mrf.mxu0 }
 0x2e5   :  { %v2526_v60 = vpop.f32.mrf.mxu0 }
 0x2e7   :  { %v1007_v45 = vpop.f32.mrf.mxu0 }
 0x2ed   :  { %v2529_v39 = vpop.f32.mrf.mxu0 }
 0x2ee   :  { %1114 = vmatpush1.msra.mxu0 %v2529_v39 }
 0x2ef   :  { %v1017_v36 = vpop.f32.mrf.mxu0  ;;  %1115 = vmatprep.subr.mxu0 %v4202_v42 }
 0x2f0   :  { %1116 = vmatpush1.msra.mxu0 %v1017_v36 }
 0x2f1   :  { %1117 = vmatprep.subr.mxu0 %v4202_v42 }
 0x2f2   :  { %1118 = vmatpush1.msra.mxu0 %v2526_v60 }
 0x2f3   :  { %1119 = vmatprep.subr.mxu0 %v4202_v42 }
 0x2f4   :  { %1120 = vmatpush1.msra.mxu0 %v1007_v45 }
 0x2f5   :  { %1121 = vmatprep.subr.mxu0 %v4202_v42  ;;  %v2532_v35 = vpop.f32.mrf.mxu0 }
 0x2f6   :  { %1122 = vmatpush1.msra.mxu0 %v2523_v57 }
 0x2f7   :  { %1123 = vmatprep.subr.mxu0 %v4202_v42  ;;  %v1027_v36 = vpop.f32.mrf.mxu0 }
 0x2f8   :  { %1124 = vmatpush1.msra.mxu0 %v997_v31 }
 0x2f9   :  { %1125 = vmatprep.subr.mxu0 %v4202_v42 }
 0x2fa   :  { %1126 = vmatpush1.msra.mxu0 %v2520_v63 }
 0x2fb   :  { %1127 = vmatprep.subr.mxu0 %v4202_v42 }
 0x2fc   :  { %1128 = vmatpush1.msra.mxu0 %v987_v54 }
 0x2fd   :  { %1129 = vmatprep.subr.mxu0 %v4202_v42  ;;  %v2535_v39 = vpop.f32.mrf.mxu0 }
 0x2fe   :  { %1130 = vmatpush1.msra.mxu0 %v2517_v2 }
 0x2ff   :  { %1131 = vmatprep.subr.mxu0 %v4202_v42  ;;  %v1037_v45 = vpop.f32.mrf.mxu0 }
 0x300   :  { %1132 = vmatpush1.msra.mxu0 %v977_v19 }
 0x301   :  { %1133 = vmatprep.subr.mxu0 %v4202_v42 }
 0x302   :  { %1134 = vmatpush1.msra.mxu0 %v2514_v33 }
 0x303   :  { %1135 = vmatprep.subr.mxu0 %v4202_v42 }
 0x304   :  { %1136 = vmatpush1.msra.mxu0 %v967_v13 }
 0x305   :  { %1137 = vmatprep.subr.mxu0 %v4202_v42  ;;  %v2538_v33 = vpop.f32.mrf.mxu0 }
 0x306   :  { %1138 = vmatpush1.msra.mxu0 %v2511_v7 }
 0x307   :  { %1139 = vmatprep.subr.mxu0 %v4202_v42  ;;  %v1047_v2 = vpop.f32.mrf.mxu0 }
 0x308   :  { %1140 = vmatpush1.msra.mxu0 %v957_v51 }
 0x309   :  { %1141 = vmatprep.subr.mxu0 %v4202_v42 }
 0x30a   :  { %1142 = vmatpush1.msra.mxu0 %v2508_v48  ;;  %v1531_v48 = vld [vmem:[%s4143_s6] sm:$0xff] }
 0x30b   :  { %1143 = vmatprep.subr.mxu0 %v4202_v42 }
 0x30c   :  { %1144 = vmatpush1.msra.mxu0 %v947_v22  ;;  %v4203_v22 = vld [vmem:[#allocation3_spill] sm:$0xff] }
 0x30d   :  { %1145 = vmatprep.subr.mxu0 %v4202_v42  ;;  %v2541_v13 = vpop.f32.mrf.mxu0 }
 0x30f   :  { %v1057_v19 = vpop.f32.mrf.mxu0 }
 0x315   :  { %v2544_v63 = vpop.f32.mrf.mxu0 }
 0x317   :  { %v1067_v7 = vpop.f32.mrf.mxu0 }
 0x31d   :  { %v2547_v54 = vpop.f32.mrf.mxu0 }
 0x31f   :  { %v1077_v57 = vpop.f32.mrf.mxu0 }
 0x325   :  { %v2550_v31 = vpop.f32.mrf.mxu0 }
 0x327   :  { %v1087_v51 = vpop.f32.mrf.mxu0 }
 0x32d   :  { %v2553_v60 = vpop.f32.mrf.mxu0 }
 0x32e   :  { %1146 = vmatpush2.msra.mxu0 %v2553_v60  ;;  %v4218_v60 = vld [vmem:[#allocation18_spill] sm:$0xff] }
 0x32f   :  { %v1097_v28 = vpop.f32.mrf.mxu0  ;;  %1147 = vmatprep.subr.mxu0 %v4202_v42 }
 0x330   :  { %1148 = vmatpush2.msra.mxu0 %v1097_v28  ;;  %v1532_v28 = vld [vmem:[%s4143_s6 + $0x8] sm:$0xff] }
 0x331   :  { %1149 = vmatprep.subr.mxu0 %v4202_v42 }
 0x332   :  { %1150 = vmatpush2.msra.mxu0 %v2550_v31  ;;  %v4216_v31 = vld [vmem:[#allocation16_spill] sm:$0xff] }
 0x333   :  { %1151 = vmatprep.subr.mxu0 %v4202_v42 }
 0x334   :  { %1152 = vmatpush2.msra.mxu0 %v1087_v51  ;;  %v4217_v51 = vld [vmem:[#allocation17_spill] sm:$0xff] }
 0x335   :  { %1153 = vmatprep.subr.mxu0 %v4202_v42 }
 0x336   :  { %1154 = vmatpush2.msra.mxu0 %v2547_v54  ;;  %v4214_v54 = vld [vmem:[#allocation14_spill] sm:$0xff] }
 0x337   :  { %1155 = vmatprep.subr.mxu0 %v4202_v42 }
 0x338   :  { %1156 = vmatpush2.msra.mxu0 %v1077_v57  ;;  %v4215_v57 = vld [vmem:[#allocation15_spill] sm:$0xff] }
 0x339   :  { %1157 = vmatprep.subr.mxu0 %v4202_v42 }
 0x33a   :  { %1158 = vmatpush2.msra.mxu0 %v2544_v63  ;;  %v4212_v63 = vld [vmem:[#allocation12_spill] sm:$0xff] }
 0x33b   :  { %1159 = vmatprep.subr.mxu0 %v4202_v42 }
 0x33c   :  { %1160 = vmatpush2.msra.mxu0 %v1067_v7  ;;  %v4213_v7 = vld [vmem:[#allocation13_spill] sm:$0xff] }
 0x33d   :  { %1161 = vmatprep.subr.mxu0 %v4202_v42 }
 0x33e   :  { %1162 = vmatpush2.msra.mxu0 %v2541_v13  ;;  %v4210_v13 = vld [vmem:[#allocation10_spill] sm:$0xff] }
 0x33f   :  { %1163 = vmatprep.subr.mxu0 %v4202_v42 }
 0x340   :  { %1164 = vmatpush2.msra.mxu0 %v1057_v19  ;;  %v4211_v19 = vld [vmem:[#allocation11_spill] sm:$0xff] }
 0x341   :  { %1165 = vmatprep.subr.mxu0 %v4202_v42 }
 0x342   :  { %1166 = vmatpush2.msra.mxu0 %v2538_v33  ;;  %v4208_v33 = vld [vmem:[#allocation8_spill] sm:$0xff] }
 0x343   :  { %1167 = vmatprep.subr.mxu0 %v4202_v42 }
 0x344   :  { %1168 = vmatpush2.msra.mxu0 %v1047_v2  ;;  %v4209_v2 = vld [vmem:[#allocation9_spill] sm:$0xff] }
 0x345   :  { %1169 = vmatprep.subr.mxu0 %v4202_v42 }
 0x346   :  { %1170 = vmatpush2.msra.mxu0 %v2535_v39  ;;  %v4206_v39 = vld [vmem:[#allocation6_spill] sm:$0xff] }
 0x347   :  { %1171 = vmatprep.subr.mxu0 %v4202_v42 }
 0x348   :  { %1172 = vmatpush2.msra.mxu0 %v1037_v45  ;;  %v4207_v45 = vld [vmem:[#allocation7_spill] sm:$0xff] }
 0x349   :  { %1173 = vmatprep.subr.mxu0 %v4202_v42 }
 0x34a   :  { %1174 = vmatpush2.msra.mxu0 %v2532_v35  ;;  %v4204_v35 = vld [vmem:[#allocation4_spill] sm:$0xff] }
 0x34b   :  { %1175 = vmatprep.subr.mxu0 %v4202_v42 }
 0x34c   :  { %1176 = vmatpush2.msra.mxu0 %v1027_v36  ;;  %v4205_v36 = vld [vmem:[#allocation5_spill] sm:$0xff] }
 0x34d   :  { %1178 = vmatmul.mubr.f32.vlgmr.msra.gmra.mxu0 %v3028_v5  ;;  %2554 = vmatprep.subr.mxu0 %v1532_v28 }
 0x34e   :  { %1182 = vmatprep.mubr.f32.mxu0 %v3031_v6  ;;  %2555 = vmatpush3.msra.mxu0 %v1532_v28  ;;  %v4219_v28 = vld [vmem:[#allocation19_spill] sm:$0xff] }
 0x34f   :  { %2556 = vmatprep.subr.mxu0 %v1531_v48 }
 0x350   :  { %2557 = vmatpush3.msra.mxu0 %v1531_v48  ;;  %v4220_v48 = vld [vmem:[#allocation20_spill] sm:$0xff] }
 0x351   :  { %1183 = vmatmul.mubr.f32.gmra.mxu0 %v3039_v8 }
 0x352   :  { %1187 = vmatprep.mubr.f32.mxu0 %v3043_v9 }
 0x355   :  { %1188 = vmatmul.mubr.f32.gmra.mxu0 %v3049_v11 }
 0x356   :  { %1192 = vmatprep.mubr.f32.mxu0 %v3052_v12 }
 0x359   :  { %1193 = vmatmul.mubr.f32.gmra.mxu0 %v3058_v14 }
 0x35a   :  { %1197 = vmatprep.mubr.f32.mxu0 %v3061_v15 }
 0x35d   :  { %1198 = vmatmul.mubr.f32.gmra.mxu0 %v3067_v17 }
 0x35e   :  { %1202 = vmatprep.mubr.f32.mxu0 %v3070_v18 }
 0x361   :  { %1203 = vmatmul.mubr.f32.gmra.mxu0 %v3076_v20 }
 0x362   :  { %1207 = vmatprep.mubr.f32.mxu0 %v3079_v21 }
 0x365   :  { %1208 = vmatmul.mubr.f32.gmra.mxu0 %v3085_v23 }
 0x366   :  { %1212 = vmatprep.mubr.f32.mxu0 %v3088_v24 }
 0x369   :  { %1213 = vmatmul.mubr.f32.gmra.mxu0 %v3094_v26 }
 0x36a   :  { %1217 = vmatprep.mubr.f32.mxu0 %v3097_v27 }
 0x36d   :  { %1218 = vmatmul.mubr.f32.gmra.mxu0 %v3103_v29 }
 0x36e   :  { %1222 = vmatprep.mubr.f32.mxu0 %v3106_v30 }
 0x371   :  { %1223 = vmatmul.mubr.f32.gmra.mxu0 %v3112_v32 }
 0x372   :  { %1227 = vmatprep.mubr.f32.mxu0 %v3115_v34 }
 0x375   :  { %1228 = vmatmul.mubr.f32.gmra.mxu0 %v3121_v37 }
 0x376   :  { %1232 = vmatprep.mubr.f32.mxu0 %v3124_v38 }
 0x379   :  { %1233 = vmatmul.mubr.f32.gmra.mxu0 %v3130_v40 }
 0x37a   :  { %1237 = vmatprep.mubr.f32.mxu0 %v3133_v41 }
 0x37d   :  { %1238 = vmatmul.mubr.f32.gmra.mxu0 %v3139_v43 }
 0x37e   :  { %1242 = vmatprep.mubr.f32.mxu0 %v3142_v44 }
 0x381   :  { %1243 = vmatmul.mubr.f32.gmra.mxu0 %v3148_v46 }
 0x382   :  { %1247 = vmatprep.mubr.f32.mxu0 %v3151_v47 }
 0x385   :  { %1248 = vmatmul.mubr.f32.gmra.mxu0 %v3157_v49 }
 0x386   :  { %1252 = vmatprep.mubr.f32.mxu0 %v3160_v50 }
 0x389   :  { %1253 = vmatmul.mubr.f32.gmra.mxu0 %v3166_v52 }
 0x38a   :  { %1257 = vmatprep.mubr.f32.mxu0 %v3169_v53 }
 0x38d   :  { %1258 = vmatmul.mubr.f32.gmra.mxu0 %v3175_v55 }
 0x38e   :  { %1262 = vmatprep.mubr.f32.mxu0 %v3178_v56 }
 0x391   :  { %1263 = vmatmul.mubr.f32.gmra.mxu0 %v3184_v58 }
 0x392   :  { %1267 = vmatprep.mubr.f32.mxu0 %v3187_v59 }
 0x395   :  { %1268 = vmatmul.mubr.f32.gmra.mxu0 %v3193_v61 }
 0x396   :  { %1272 = vmatprep.mubr.f32.mxu0 %v3196_v62 }
 0x399   :  { %1273 = vmatmul.mubr.f32.gmra.mxu0 %v3202_v0 }
 0x39a   :  { %1277 = vmatprep.mubr.f32.mxu0 %v3205_v1 }
 0x39d   :  { %1278 = vmatmul.mubr.f32.gmra.mxu0 %v3211_v3 }
 0x39e   :  { %1282 = vmatprep.mubr.f32.mxu0 %v3214_v4 }
 0x3a1   :  { %1283 = vmatmul.mubr.f32.gmra.mxu0 %v3220_v10 }
 0x3a2   :  { %1287 = vmatprep.mubr.f32.mxu0 %v3226_v16 }
 0x3a5   :  { %1288 = vmatmul.mubr.f32.gmra.mxu0 %v3235_v25 }
 0x3a6   :  { %1292 = vmatprep.mubr.f32.mxu0 %v4203_v22 }
 0x3a9   :  { %1293 = vmatmul.mubr.f32.gmra.mxu0 %v4204_v35 }
 0x3aa   :  { %1297 = vmatprep.mubr.f32.mxu0 %v4205_v36 }
 0x3ad   :  { %1298 = vmatmul.mubr.f32.gmra.mxu0 %v4206_v39 }
 0x3ae   :  { %1302 = vmatprep.mubr.f32.mxu0 %v4207_v45 }
 0x3b1   :  { %1303 = vmatmul.mubr.f32.gmra.mxu0 %v4208_v33 }
 0x3b2   :  { %1307 = vmatprep.mubr.f32.mxu0 %v4209_v2 }
 0x3b5   :  { %1308 = vmatmul.mubr.f32.gmra.mxu0 %v4210_v13 }
 0x3b6   :  { %1312 = vmatprep.mubr.f32.mxu0 %v4211_v19 }
 0x3b9   :  { %1313 = vmatmul.mubr.f32.gmra.mxu0 %v4212_v63  ;;  %v3620_v63 = vld [vmem:[%s4144_s5] ss:$0 sm:$0xff]  ;;  %s2802_s5 = smov 16  }
 0x3ba   :  { %1317 = vmatprep.mubr.f32.mxu0 %v4213_v7 }
 0x3bd   :  { %1318 = vmatmul.mubr.f32.gmra.mxu0 %v4214_v54 }
 0x3be   :  { %1322 = vmatprep.mubr.f32.mxu0 %v4215_v57 }
 0x3c1   :  { %1323 = vmatmul.mubr.f32.gmra.mxu0 %v4216_v31 }
 0x3c2   :  { %1327 = vmatprep.mubr.f32.mxu0 %v4217_v51 }
 0x3c5   :  { %1328 = vmatmul.mubr.f32.gmra.mxu0 %v4218_v60 }
 0x3c6   :  { %1332 = vmatprep.mubr.f32.mxu0 %v4219_v28 }
 0x3c9   :  { %1333 = vmatmul.mubr.f32.gmra.mxu0 %v4220_v48 }
 0x40d   :  { %v1179_v7 = vpop.f32.mrf.mxu0 }
 0x40e   :  { %v1180_v54 = vadd.f32 %v3620_v63, %v1179_v7 }
 0x40f   :  { %v1181_v19 = vpop.f32.mrf.mxu0 }
 0x410   :  { %2673 = vtanh.f32 %v1180_v54 }
 0x411   :  { %v1184_v57 = vpop.f32.mrf.mxu0 }
 0x412   :  { %v1185_v31 = vadd.f32 %v3620_v63, %v1184_v57 }
 0x413   :  { %v1186_v51 = vpop.f32.mrf.mxu0 }
 0x414   :  { %2675 = vtanh.f32 %v1185_v31 }
 0x415   :  { %v1189_v60 = vpop.f32.mrf.mxu0 }
 0x416   :  { %v1190_v28 = vadd.f32 %v3620_v63, %v1189_v60 }
 0x417   :  { %v1191_v13 = vpop.f32.mrf.mxu0 }
 0x418   :  { %2677 = vtanh.f32 %v1190_v28 }
 0x419   :  { %v1194_v48 = vpop.f32.mrf.mxu0 }
 0x41a   :  { %v1195_v2 = vadd.f32 %v3620_v63, %v1194_v48 }
 0x41b   :  { %v1196_v33 = vpop.f32.mrf.mxu0 }
 0x41c   :  { %2679 = vtanh.f32 %v1195_v2 }
 0x41d   :  { %v2674_v45 = vpop.eup %2673  ;;  %v1199_v39 = vpop.f32.mrf.mxu0 }
 0x41e   :  { %v1200_v19 = vadd.f32 %v3620_v63, %v1199_v39  ;;  %1402 = vrot.lane.b32.xlu0 %v2674_v45, %s2802_s5  ;;  %2558 = vmatprep.mubr.msk.f32.mxu0 %vm750_vm2, %v2674_v45 }
 0x41f   :  { %v1201_v7 = vpop.f32.mrf.mxu0 }
 0x420   :  { %2681 = vtanh.f32 %v1200_v19 }
 0x421   :  { %v2676_v54 = vpop.eup %2675  ;;  %v1204_v57 = vpop.f32.mrf.mxu0 }
 0x422   :  { %v1205_v13 = vadd.f32 %v3620_v63, %v1204_v57  ;;  %1404 = vrot.lane.b32.xlu0 %v2676_v54, %s2802_s5  ;;  %2559 = vmatmul.mubr.msk.f32.vlgmr.msra.gmra.mxu0 %vm750_vm2, %v2676_v54 }
 0x423   :  { %v1206_v33 = vpop.f32.mrf.mxu0 }
 0x424   :  { %2683 = vtanh.f32 %v1205_v13 }
 0x425   :  { %v2678_v2 = vpop.eup %2677  ;;  %v1209_v31 = vpop.f32.mrf.mxu0 }
 0x426   :  { %v1210_v39 = vadd.f32 %v3620_v63, %v1209_v31  ;;  %1406 = vrot.lane.b32.xlu1 %v2678_v2, %s2802_s5  ;;  %2561 = vmatprep.mubr.msk.f32.mxu0 %vm750_vm2, %v2678_v2 }
 0x427   :  { %v1211_v45 = vpop.f32.mrf.mxu0 }
 0x428   :  { %2685 = vtanh.f32 %v1210_v39 }
 0x429   :  { %v2680_v51 = vpop.eup %2679  ;;  %v1214_v60 = vpop.f32.mrf.mxu0 }
 0x42a   :  { %v1215_v28 = vadd.f32 %v3620_v63, %v1214_v60  ;;  %1408 = vrot.lane.b32.xlu1 %v2680_v51, %s2802_s5  ;;  %2562 = vmatmul.mubr.msk.f32.gmra.mxu0 %vm750_vm2, %v2680_v51 }
 0x42b   :  { %v1216_v48 = vpop.f32.mrf.mxu0 }
 0x42c   :  { %2687 = vtanh.f32 %v1215_v28 }
 0x42d   :  { %v2682_v19 = vpop.eup %2681  ;;  %v1219_v7 = vpop.f32.mrf.mxu0 }
 0x42e   :  { %v1220_v54 = vadd.f32 %v3620_v63, %v1219_v7  ;;  %1410 = vrot.lane.b32.xlu0 %v2682_v19, %s2802_s5  ;;  %2564 = vmatprep.mubr.msk.f32.mxu0 %vm750_vm2, %v2682_v19 }
 0x42f   :  { %v1221_v57 = vpop.f32.mrf.mxu0 }
 0x430   :  { %2689 = vtanh.f32 %v1220_v54 }
 0x431   :  { %v2684_v13 = vpop.eup %2683  ;;  %v1224_v33 = vpop.f32.mrf.mxu0 }
 0x432   :  { %v1225_v2 = vadd.f32 %v3620_v63, %v1224_v33  ;;  %1412 = vrot.lane.b32.xlu1 %v2684_v13, %s2802_s5  ;;  %2565 = vmatmul.mubr.msk.f32.gmra.mxu0 %vm750_vm2, %v2684_v13 }
 0x433   :  { %v1226_v31 = vpop.f32.mrf.mxu0 }
 0x434   :  { %2691 = vtanh.f32 %v1225_v2 }
 0x435   :  { %v2686_v39 = vpop.eup %2685  ;;  %v1229_v45 = vpop.f32.mrf.mxu0 }
 0x436   :  { %v1230_v51 = vadd.f32 %v3620_v63, %v1229_v45  ;;  %1414 = vrot.lane.b32.xlu0 %v2686_v39, %s2802_s5  ;;  %2567 = vmatprep.mubr.msk.f32.mxu0 %vm750_vm2, %v2686_v39 }
 0x437   :  { %v1231_v60 = vpop.f32.mrf.mxu0 }
 0x438   :  { %2693 = vtanh.f32 %v1230_v51 }
 0x439   :  { %v2688_v28 = vpop.eup %2687  ;;  %v1234_v48 = vpop.f32.mrf.mxu0 }
 0x43a   :  { %v1235_v19 = vadd.f32 %v3620_v63, %v1234_v48  ;;  %1416 = vrot.lane.b32.xlu1 %v2688_v28, %s2802_s5  ;;  %2568 = vmatmul.mubr.msk.f32.gmra.mxu0 %vm750_vm2, %v2688_v28 }
 0x43b   :  { %v1236_v7 = vpop.f32.mrf.mxu0 }
 0x43c   :  { %2695 = vtanh.f32 %v1235_v19 }
 0x43d   :  { %v2690_v54 = vpop.eup %2689  ;;  %v1239_v57 = vpop.f32.mrf.mxu0 }
 0x43e   :  { %v1240_v13 = vadd.f32 %v3620_v63, %v1239_v57  ;;  %1418 = vrot.lane.b32.xlu0 %v2690_v54, %s2802_s5  ;;  %2570 = vmatprep.mubr.msk.f32.mxu0 %vm750_vm2, %v2690_v54 }
 0x43f   :  { %v1241_v33 = vpop.f32.mrf.mxu0 }
 0x440   :  { %2697 = vtanh.f32 %v1240_v13 }
 0x441   :  { %v2692_v2 = vpop.eup %2691  ;;  %v1244_v31 = vpop.f32.mrf.mxu0 }
 0x442   :  { %v1245_v39 = vadd.f32 %v3620_v63, %v1244_v31  ;;  %1420 = vrot.lane.b32.xlu1 %v2692_v2, %s2802_s5  ;;  %2571 = vmatmul.mubr.msk.f32.gmra.mxu0 %vm750_vm2, %v2692_v2 }
 0x443   :  { %v1246_v45 = vpop.f32.mrf.mxu0 }
 0x444   :  { %2699 = vtanh.f32 %v1245_v39 }
 0x445   :  { %v2694_v51 = vpop.eup %2693  ;;  %v1249_v60 = vpop.f32.mrf.mxu0 }
 0x446   :  { %v1250_v28 = vadd.f32 %v3620_v63, %v1249_v60  ;;  %1422 = vrot.lane.b32.xlu0 %v2694_v51, %s2802_s5  ;;  %2573 = vmatprep.mubr.msk.f32.mxu0 %vm750_vm2, %v2694_v51 }
 0x447   :  { %v1251_v48 = vpop.f32.mrf.mxu0 }
 0x448   :  { %2701 = vtanh.f32 %v1250_v28 }
 0x449   :  { %v2696_v19 = vpop.eup %2695  ;;  %v1254_v7 = vpop.f32.mrf.mxu0 }
 0x44a   :  { %v1255_v54 = vadd.f32 %v3620_v63, %v1254_v7  ;;  %1424 = vrot.lane.b32.xlu1 %v2696_v19, %s2802_s5  ;;  %2574 = vmatmul.mubr.msk.f32.gmra.mxu0 %vm750_vm2, %v2696_v19 }
 0x44b   :  { %v1256_v57 = vpop.f32.mrf.mxu0 }
 0x44c   :  { %2703 = vtanh.f32 %v1255_v54 }
 0x44d   :  { %v2698_v13 = vpop.eup %2697  ;;  %v1259_v33 = vpop.f32.mrf.mxu0 }
 0x44e   :  { %v1260_v2 = vadd.f32 %v3620_v63, %v1259_v33  ;;  %1426 = vrot.lane.b32.xlu0 %v2698_v13, %s2802_s5  ;;  %2576 = vmatprep.mubr.msk.f32.mxu0 %vm750_vm2, %v2698_v13 }
 0x44f   :  { %v1261_v31 = vpop.f32.mrf.mxu0 }
 0x450   :  { %2705 = vtanh.f32 %v1260_v2 }
 0x451   :  { %v2700_v39 = vpop.eup %2699  ;;  %v1264_v45 = vpop.f32.mrf.mxu0 }
 0x452   :  { %v1265_v51 = vadd.f32 %v3620_v63, %v1264_v45  ;;  %1428 = vrot.lane.b32.xlu1 %v2700_v39, %s2802_s5  ;;  %2577 = vmatmul.mubr.msk.f32.gmra.mxu0 %vm750_vm2, %v2700_v39 }
 0x453   :  { %v1266_v60 = vpop.f32.mrf.mxu0 }
 0x454   :  { %2707 = vtanh.f32 %v1265_v51 }
 0x455   :  { %v2702_v28 = vpop.eup %2701  ;;  %v1269_v48 = vpop.f32.mrf.mxu0 }
 0x456   :  { %v1270_v19 = vadd.f32 %v3620_v63, %v1269_v48  ;;  %1430 = vrot.lane.b32.xlu0 %v2702_v28, %s2802_s5  ;;  %2579 = vmatprep.mubr.msk.f32.mxu0 %vm750_vm2, %v2702_v28 }
 0x457   :  { %v1271_v7 = vpop.f32.mrf.mxu0 }
 0x458   :  { %2709 = vtanh.f32 %v1270_v19 }
 0x459   :  { %v2704_v54 = vpop.eup %2703  ;;  %v1274_v57 = vpop.f32.mrf.mxu0 }
 0x45a   :  { %v1275_v13 = vadd.f32 %v3620_v63, %v1274_v57  ;;  %1432 = vrot.lane.b32.xlu1 %v2704_v54, %s2802_s5  ;;  %2580 = vmatmul.mubr.msk.f32.gmra.mxu0 %vm750_vm2, %v2704_v54 }
 0x45b   :  { %v1276_v33 = vpop.f32.mrf.mxu0 }
 0x45c   :  { %2711 = vtanh.f32 %v1275_v13 }
 0x45d   :  { %v2706_v2 = vpop.eup %2705  ;;  %v1279_v31 = vpop.f32.mrf.mxu0 }
 0x45e   :  { %v1280_v39 = vadd.f32 %v3620_v63, %v1279_v31  ;;  %1434 = vrot.lane.b32.xlu0 %v2706_v2, %s2802_s5  ;;  %2582 = vmatprep.mubr.msk.f32.mxu0 %vm750_vm2, %v2706_v2 }
 0x45f   :  { %v1281_v45 = vpop.f32.mrf.mxu0 }
 0x460   :  { %2713 = vtanh.f32 %v1280_v39 }
 0x461   :  { %v2708_v51 = vpop.eup %2707  ;;  %v1284_v60 = vpop.f32.mrf.mxu0 }
 0x462   :  { %v1285_v28 = vadd.f32 %v3620_v63, %v1284_v60  ;;  %1436 = vrot.lane.b32.xlu1 %v2708_v51, %s2802_s5  ;;  %2583 = vmatmul.mubr.msk.f32.gmra.mxu0 %vm750_vm2, %v2708_v51 }
 0x463   :  { %v1286_v48 = vpop.f32.mrf.mxu0 }
 0x464   :  { %2715 = vtanh.f32 %v1285_v28 }
 0x465   :  { %v2710_v19 = vpop.eup %2709  ;;  %v1289_v7 = vpop.f32.mrf.mxu0 }
 0x466   :  { %v1290_v54 = vadd.f32 %v3620_v63, %v1289_v7  ;;  %1438 = vrot.lane.b32.xlu0 %v2710_v19, %s2802_s5  ;;  %2585 = vmatprep.mubr.msk.f32.mxu0 %vm750_vm2, %v2710_v19 }
 0x467   :  { %v1291_v57 = vpop.f32.mrf.mxu0 }
 0x468   :  { %2717 = vtanh.f32 %v1290_v54 }
 0x469   :  { %v2712_v13 = vpop.eup %2711  ;;  %v1294_v33 = vpop.f32.mrf.mxu0 }
 0x46a   :  { %v1295_v2 = vadd.f32 %v3620_v63, %v1294_v33  ;;  %1440 = vrot.lane.b32.xlu1 %v2712_v13, %s2802_s5  ;;  %2586 = vmatmul.mubr.msk.f32.gmra.mxu0 %vm750_vm2, %v2712_v13 }
 0x46b   :  { %v1296_v31 = vpop.f32.mrf.mxu0 }
 0x46c   :  { %2719 = vtanh.f32 %v1295_v2 }
 0x46d   :  { %v2714_v39 = vpop.eup %2713  ;;  %v1299_v45 = vpop.f32.mrf.mxu0 }
 0x46e   :  { %v1300_v51 = vadd.f32 %v3620_v63, %v1299_v45  ;;  %1442 = vrot.lane.b32.xlu0 %v2714_v39, %s2802_s5  ;;  %2588 = vmatprep.mubr.msk.f32.mxu0 %vm750_vm2, %v2714_v39 }
 0x46f   :  { %v1301_v60 = vpop.f32.mrf.mxu0 }
 0x470   :  { %2721 = vtanh.f32 %v1300_v51 }
 0x471   :  { %v2716_v28 = vpop.eup %2715  ;;  %v1304_v48 = vpop.f32.mrf.mxu0 }
 0x472   :  { %v1305_v19 = vadd.f32 %v3620_v63, %v1304_v48  ;;  %1444 = vrot.lane.b32.xlu1 %v2716_v28, %s2802_s5  ;;  %2589 = vmatmul.mubr.msk.f32.gmra.mxu0 %vm750_vm2, %v2716_v28 }
 0x473   :  { %v1306_v7 = vpop.f32.mrf.mxu0 }
 0x474   :  { %2723 = vtanh.f32 %v1305_v19 }
 0x475   :  { %v2718_v54 = vpop.eup %2717  ;;  %v1309_v57 = vpop.f32.mrf.mxu0 }
 0x476   :  { %v1310_v13 = vadd.f32 %v3620_v63, %v1309_v57  ;;  %1446 = vrot.lane.b32.xlu0 %v2718_v54, %s2802_s5  ;;  %2591 = vmatprep.mubr.msk.f32.mxu0 %vm750_vm2, %v2718_v54 }
 0x477   :  { %v1311_v33 = vpop.f32.mrf.mxu0 }
 0x478   :  { %2725 = vtanh.f32 %v1310_v13 }
 0x479   :  { %v2720_v2 = vpop.eup %2719  ;;  %v1314_v31 = vpop.f32.mrf.mxu0 }
 0x47a   :  { %v1315_v39 = vadd.f32 %v3620_v63, %v1314_v31  ;;  %1448 = vrot.lane.b32.xlu1 %v2720_v2, %s2802_s5  ;;  %2592 = vmatmul.mubr.msk.f32.gmra.mxu0 %vm750_vm2, %v2720_v2 }
 0x47b   :  { %v1316_v45 = vpop.f32.mrf.mxu0 }
 0x47c   :  { %2727 = vtanh.f32 %v1315_v39 }
 0x47d   :  { %v2722_v51 = vpop.eup %2721  ;;  %v1319_v60 = vpop.f32.mrf.mxu0 }
 0x47e   :  { %v1320_v28 = vadd.f32 %v3620_v63, %v1319_v60  ;;  %1450 = vrot.lane.b32.xlu0 %v2722_v51, %s2802_s5  ;;  %2594 = vmatprep.mubr.msk.f32.mxu0 %vm750_vm2, %v2722_v51 }
 0x47f   :  { %v1321_v48 = vpop.f32.mrf.mxu0 }
 0x480   :  { %2729 = vtanh.f32 %v1320_v28 }
 0x481   :  { %v2724_v19 = vpop.eup %2723  ;;  %v1324_v7 = vpop.f32.mrf.mxu0 }
 0x482   :  { %v1325_v54 = vadd.f32 %v3620_v63, %v1324_v7  ;;  %1452 = vrot.lane.b32.xlu1 %v2724_v19, %s2802_s5  ;;  %2595 = vmatmul.mubr.msk.f32.gmra.mxu0 %vm750_vm2, %v2724_v19 }
 0x483   :  { %v1326_v57 = vpop.f32.mrf.mxu0 }
 0x484   :  { %2731 = vtanh.f32 %v1325_v54 }
 0x485   :  { %v2726_v13 = vpop.eup %2725  ;;  %v1329_v33 = vpop.f32.mrf.mxu0 }
 0x486   :  { %v1330_v2 = vadd.f32 %v3620_v63, %v1329_v33  ;;  %1454 = vrot.lane.b32.xlu0 %v2726_v13, %s2802_s5  ;;  %2597 = vmatprep.mubr.msk.f32.mxu0 %vm750_vm2, %v2726_v13 }
 0x487   :  { %v1331_v31 = vpop.f32.mrf.mxu0 }
 0x488   :  { %2733 = vtanh.f32 %v1330_v2 }
 0x489   :  { %v2728_v39 = vpop.eup %2727  ;;  %v1334_v45 = vpop.f32.mrf.mxu0 }
 0x48a   :  { %v1335_v51 = vadd.f32 %v3620_v63, %v1334_v45  ;;  %1456 = vrot.lane.b32.xlu1 %v2728_v39, %s2802_s5  ;;  %2598 = vmatmul.mubr.msk.f32.gmra.mxu0 %vm750_vm2, %v2728_v39 }
 0x48b   :  { %v1336_v60 = vpop.f32.mrf.mxu0 }
 0x48c   :  { %2735 = vtanh.f32 %v1335_v51 }
 0x48d   :  { %v2730_v28 = vpop.eup %2729 }
 0x48e   :  { %1458 = vrot.lane.b32.xlu0 %v2730_v28, %s2802_s5  ;;  %2600 = vmatprep.mubr.msk.f32.mxu0 %vm750_vm2, %v2730_v28 }
 0x490   :  { %v1403_v48 = vpop.permute.xlu0 %1402 }
 0x491   :  { %v2732_v19 = vpop.eup %2731  ;;  %1499 = vst.msk [vmem:[%s4142_s8] sm:$0xff] %vm1498_vm3, %v1403_v48 }
 0x492   :  { %1460 = vrot.lane.b32.xlu1 %v2732_v19, %s2802_s5  ;;  %2601 = vmatmul.mubr.msk.f32.gmra.mxu0 %vm750_vm2, %v2732_v19 }
 0x494   :  { %v1405_v63 = vpop.permute.xlu0 %1404 }
 0x495   :  { %v2734_v7 = vpop.eup %2733  ;;  %1500 = vst.msk [vmem:[%s4142_s8 + $0x8] sm:$0xff] %vm1498_vm3, %v1405_v63 }
 0x496   :  { %1462 = vrot.lane.b32.xlu0 %v2734_v7, %s2802_s5  ;;  %2603 = vmatprep.mubr.msk.f32.mxu0 %vm750_vm2, %v2734_v7 }
 0x498   :  { %v1407_v54 = vpop.permute.xlu1 %1406 }
 0x499   :  { %v2736_v57 = vpop.eup %2735  ;;  %1501 = vst.msk [vmem:[%s4142_s8 + $0x10] sm:$0xff] %vm1498_vm3, %v1407_v54 }
 0x49a   :  { %1464 = vrot.lane.b32.xlu1 %v2736_v57, %s2802_s5  ;;  %2604 = vmatmul.mubr.msk.f32.gmra.mxu0 %vm750_vm2, %v2736_v57 }
 0x49c   :  { %v1409_v13 = vpop.permute.xlu1 %1408 }
 0x49d   :  { %1502 = vst.msk [vmem:[%s4142_s8 + $0x18] sm:$0xff] %vm1498_vm3, %v1409_v13 }
 0x4a0   :  { %v1411_v33 = vpop.permute.xlu0 %1410 }
 0x4a1   :  { %1503 = vst.msk [vmem:[%s4142_s8 + $0x20] sm:$0xff] %vm1498_vm3, %v1411_v33 }
 0x4a4   :  { %v1413_v2 = vpop.permute.xlu1 %1412 }
 0x4a5   :  { %1504 = vst.msk [vmem:[%s4142_s8 + $0x28] sm:$0xff] %vm1498_vm3, %v1413_v2 }
 0x4a8   :  { %v1415_v31 = vpop.permute.xlu0 %1414 }
 0x4a9   :  { %1505 = vst.msk [vmem:[%s4142_s8 + $0x30] sm:$0xff] %vm1498_vm3, %v1415_v31 }
 0x4ac   :  { %v1417_v39 = vpop.permute.xlu1 %1416 }
 0x4ad   :  { %1506 = vst.msk [vmem:[%s4142_s8 + $0x38] sm:$0xff] %vm1498_vm3, %v1417_v39 }
 0x4b0   :  { %v1419_v45 = vpop.permute.xlu0 %1418 }
 0x4b1   :  { %1507 = vst.msk [vmem:[%s4142_s8 + $0x40] sm:$0xff] %vm1498_vm3, %v1419_v45 }
 0x4b4   :  { %v1421_v51 = vpop.permute.xlu1 %1420 }
 0x4b5   :  { %1508 = vst.msk [vmem:[%s4142_s8 + $0x48] sm:$0xff] %vm1498_vm3, %v1421_v51 }
 0x4b8   :  { %v1423_v60 = vpop.permute.xlu0 %1422 }
 0x4b9   :  { %1509 = vst.msk [vmem:[%s4142_s8 + $0x50] sm:$0xff] %vm1498_vm3, %v1423_v60 }
 0x4bc   :  { %v1425_v28 = vpop.permute.xlu1 %1424 }
 0x4bd   :  { %1510 = vst.msk [vmem:[%s4142_s8 + $0x58] sm:$0xff] %vm1498_vm3, %v1425_v28 }
 0x4c0   :  { %v1427_v48 = vpop.permute.xlu0 %1426 }
 0x4c1   :  { %1511 = vst.msk [vmem:[%s4142_s8 + $0x60] sm:$0xff] %vm1498_vm3, %v1427_v48 }
 0x4c4   :  { %v1429_v19 = vpop.permute.xlu1 %1428 }
 0x4c5   :  { %1512 = vst.msk [vmem:[%s4142_s8 + $0x68] sm:$0xff] %vm1498_vm3, %v1429_v19 }
 0x4c8   :  { %v1431_v63 = vpop.permute.xlu0 %1430 }
 0x4c9   :  { %1513 = vst.msk [vmem:[%s4142_s8 + $0x70] sm:$0xff] %vm1498_vm3, %v1431_v63 }
 0x4cc   :  { %v1433_v7 = vpop.permute.xlu1 %1432 }
 0x4cd   :  { %1514 = vst.msk [vmem:[%s4142_s8 + $0x78] sm:$0xff] %vm1498_vm3, %v1433_v7 }
 0x4d0   :  { %v1435_v54 = vpop.permute.xlu0 %1434 }
 0x4d1   :  { %1515 = vst.msk [vmem:[%s4142_s8 + $0x80] sm:$0xff] %vm1498_vm3, %v1435_v54 }
 0x4d4   :  { %v1437_v57 = vpop.permute.xlu1 %1436 }
 0x4d5   :  { %1516 = vst.msk [vmem:[%s4142_s8 + $0x88] sm:$0xff] %vm1498_vm3, %v1437_v57 }
 0x4d8   :  { %v1439_v13 = vpop.permute.xlu0 %1438 }
 0x4d9   :  { %1517 = vst.msk [vmem:[%s4142_s8 + $0x90] sm:$0xff] %vm1498_vm3, %v1439_v13 }
 0x4dc   :  { %v1441_v33 = vpop.permute.xlu1 %1440 }
 0x4dd   :  { %1518 = vst.msk [vmem:[%s4142_s8 + $0x98] sm:$0xff] %vm1498_vm3, %v1441_v33 }
 0x4e0   :  { %v1443_v2 = vpop.permute.xlu0 %1442 }
 0x4e1   :  { %1519 = vst.msk [vmem:[%s4142_s8 + $0xa0] sm:$0xff] %vm1498_vm3, %v1443_v2 }
 0x4e2   :  { %v2560_v51 = vpop.f32.mrf.mxu0 }
 0x4e4   :  { %v1445_v31 = vpop.permute.xlu1 %1444  ;;  %v1663_v28 = vpop.f32.mrf.mxu0 }
 0x4e5   :  { %1520 = vst.msk [vmem:[%s4142_s8 + $0xa8] sm:$0xff] %vm1498_vm3, %v1445_v31 }
 0x4e8   :  { %v1447_v39 = vpop.permute.xlu0 %1446 }
 0x4e9   :  { %1521 = vst.msk [vmem:[%s4142_s8 + $0xb0] sm:$0xff] %vm1498_vm3, %v1447_v39 }
 0x4ea   :  { %v2563_v19 = vpop.f32.mrf.mxu0 }
 0x4ec   :  { %v1449_v45 = vpop.permute.xlu1 %1448  ;;  %v1673_v7 = vpop.f32.mrf.mxu0 }
 0x4ed   :  { %1522 = vst.msk [vmem:[%s4142_s8 + $0xb8] sm:$0xff] %vm1498_vm3, %v1449_v45 }
 0x4f0   :  { %v1451_v60 = vpop.permute.xlu0 %1450 }
 0x4f1   :  { %1523 = vst.msk [vmem:[%s4142_s8 + $0xc0] sm:$0xff] %vm1498_vm3, %v1451_v60 }
 0x4f2   :  { %v2566_v54 = vpop.f32.mrf.mxu0 }
 0x4f4   :  { %v1453_v48 = vpop.permute.xlu1 %1452  ;;  %v1683_v13 = vpop.f32.mrf.mxu0 }
 0x4f5   :  { %1524 = vst.msk [vmem:[%s4142_s8 + $0xc8] sm:$0xff] %vm1498_vm3, %v1453_v48 }
 0x4f8   :  { %v1455_v63 = vpop.permute.xlu0 %1454 }
 0x4f9   :  { %1525 = vst.msk [vmem:[%s4142_s8 + $0xd0] sm:$0xff] %vm1498_vm3, %v1455_v63 }
 0x4fa   :  { %v2569_v2 = vpop.f32.mrf.mxu0 }
 0x4fc   :  { %v1457_v57 = vpop.permute.xlu1 %1456  ;;  %v1693_v39 = vpop.f32.mrf.mxu0 }
 0x4fd   :  { %1526 = vst.msk [vmem:[%s4142_s8 + $0xd8] sm:$0xff] %vm1498_vm3, %v1457_v57 }
 0x500   :  { %v1459_v33 = vpop.permute.xlu0 %1458 }
 0x501   :  { %1527 = vst.msk [vmem:[%s4142_s8 + $0xe0] sm:$0xff] %vm1498_vm3, %v1459_v33 }
 0x502   :  { %v2572_v45 = vpop.f32.mrf.mxu0 }
 0x504   :  { %v1461_v31 = vpop.permute.xlu1 %1460  ;;  %v1703_v48 = vpop.f32.mrf.mxu0 }
 0x505   :  { %1528 = vst.msk [vmem:[%s4142_s8 + $0xe8] sm:$0xff] %vm1498_vm3, %v1461_v31 }
 0x508   :  { %v1463_v60 = vpop.permute.xlu0 %1462 }
 0x509   :  { %1529 = vst.msk [vmem:[%s4142_s8 + $0xf0] sm:$0xff] %vm1498_vm3, %v1463_v60 }
 0x50a   :  { %v2575_v57 = vpop.f32.mrf.mxu0 }
 0x50c   :  { %v1465_v63 = vpop.permute.xlu1 %1464  ;;  %v1713_v33 = vpop.f32.mrf.mxu0 }
 0x50d   :  { %1530 = vst.msk [vmem:[%s4142_s8 + $0xf8] sm:$0xff] %vm1498_vm3, %v1465_v63 }
 0x512   :  { %v2578_v36 = vpop.f32.mrf.mxu0 }
 0x514   :  { %v1723_v35 = vpop.f32.mrf.mxu0 }
 0x51a   :  { %v2581_v31 = vpop.f32.mrf.mxu0 }
 0x51b   :  { %1830 = vmatpush1.msra.mxu1 %v2581_v31 }
 0x51c   :  { %v1733_v22 = vpop.f32.mrf.mxu0  ;;  %1831 = vmatprep.subr.mxu1 %v4202_v42 }
 0x51d   :  { %1832 = vmatpush1.msra.mxu1 %v1733_v22 }
 0x51e   :  { %1833 = vmatprep.subr.mxu1 %v4202_v42 }
 0x51f   :  { %1834 = vmatpush1.msra.mxu1 %v2578_v36 }
 0x520   :  { %1835 = vmatprep.subr.mxu1 %v4202_v42 }
 0x521   :  { %1836 = vmatpush1.msra.mxu1 %v1723_v35 }
 0x522   :  { %1837 = vmatprep.subr.mxu1 %v4202_v42  ;;  %v2584_v22 = vpop.f32.mrf.mxu0 }
 0x523   :  { %1838 = vmatpush1.msra.mxu1 %v2575_v57 }
 0x524   :  { %1839 = vmatprep.subr.mxu1 %v4202_v42  ;;  %v1743_v35 = vpop.f32.mrf.mxu0 }
 0x525   :  { %1840 = vmatpush1.msra.mxu1 %v1713_v33 }
 0x526   :  { %1841 = vmatprep.subr.mxu1 %v4202_v42 }
 0x527   :  { %1842 = vmatpush1.msra.mxu1 %v2572_v45 }
 0x528   :  { %1843 = vmatprep.subr.mxu1 %v4202_v42 }
 0x529   :  { %1844 = vmatpush1.msra.mxu1 %v1703_v48 }
 0x52a   :  { %1845 = vmatprep.subr.mxu1 %v4202_v42  ;;  %v2587_v36 = vpop.f32.mrf.mxu0 }
 0x52b   :  { %1846 = vmatpush1.msra.mxu1 %v2569_v2 }
 0x52c   :  { %1847 = vmatprep.subr.mxu1 %v4202_v42  ;;  %v1753_v2 = vpop.f32.mrf.mxu0 }
 0x52d   :  { %1848 = vmatpush1.msra.mxu1 %v1693_v39 }
 0x52e   :  { %1849 = vmatprep.subr.mxu1 %v4202_v42 }
 0x52f   :  { %1850 = vmatpush1.msra.mxu1 %v2566_v54 }
 0x530   :  { %1851 = vmatprep.subr.mxu1 %v4202_v42 }
 0x531   :  { %1852 = vmatpush1.msra.mxu1 %v1683_v13 }
 0x532   :  { %1853 = vmatprep.subr.mxu1 %v4202_v42  ;;  %v2590_v54 = vpop.f32.mrf.mxu0 }
 0x533   :  { %1854 = vmatpush1.msra.mxu1 %v2563_v19 }
 0x534   :  { %1855 = vmatprep.subr.mxu1 %v4202_v42  ;;  %v1763_v39 = vpop.f32.mrf.mxu0 }
 0x535   :  { %1856 = vmatpush1.msra.mxu1 %v1673_v7 }
 0x536   :  { %1857 = vmatprep.subr.mxu1 %v4202_v42 }
 0x537   :  { %1858 = vmatpush1.msra.mxu1 %v2560_v51  ;;  %v13_v51 = vstv %s4145_s7  ;;  %s2803_s7 = smov 32  }
 0x538   :  { %1859 = vmatprep.subr.mxu1 %v4202_v42  ;;  %14 = vst [vmem:[#allocation2] sm:$0x1] %v13_v51 }
 0x539   :  { %1860 = vmatpush1.msra.mxu1 %v1663_v28 }
 0x53a   :  { %1861 = vmatprep.subr.mxu1 %v4202_v42  ;;  %v2593_v13 = vpop.f32.mrf.mxu0 }
 0x53c   :  { %v1773_v45 = vpop.f32.mrf.mxu0 }
 0x542   :  { %v2596_v60 = vpop.f32.mrf.mxu0 }
 0x544   :  { %v1783_v19 = vpop.f32.mrf.mxu0 }
 0x54a   :  { %v2599_v48 = vpop.f32.mrf.mxu0 }
 0x54c   :  { %v1793_v63 = vpop.f32.mrf.mxu0 }
 0x552   :  { %v2602_v57 = vpop.f32.mrf.mxu0 }
 0x554   :  { %v1803_v7 = vpop.f32.mrf.mxu0 }
 0x55a   :  { %v2605_v33 = vpop.f32.mrf.mxu0 }
 0x55b   :  { %1862 = vmatpush2.msra.mxu1 %v2605_v33 }
 0x55c   :  { %v1813_v31 = vpop.f32.mrf.mxu0  ;;  %1863 = vmatprep.subr.mxu1 %v4202_v42 }
 0x55d   :  { %1864 = vmatpush2.msra.mxu1 %v1813_v31 }
 0x55e   :  { %1865 = vmatprep.subr.mxu1 %v4202_v42 }
 0x55f   :  { %1866 = vmatpush2.msra.mxu1 %v2602_v57 }
 0x560   :  { %1867 = vmatprep.subr.mxu1 %v4202_v42 }
 0x561   :  { %1868 = vmatpush2.msra.mxu1 %v1803_v7 }
 0x562   :  { %1869 = vmatprep.subr.mxu1 %v4202_v42 }
 0x563   :  { %1870 = vmatpush2.msra.mxu1 %v2599_v48 }
 0x564   :  { %1871 = vmatprep.subr.mxu1 %v4202_v42 }
 0x565   :  { %1872 = vmatpush2.msra.mxu1 %v1793_v63 }
 0x566   :  { %1873 = vmatprep.subr.mxu1 %v4202_v42 }
 0x567   :  { %1874 = vmatpush2.msra.mxu1 %v2596_v60 }
 0x568   :  { %1875 = vmatprep.subr.mxu1 %v4202_v42 }
 0x569   :  { %1876 = vmatpush2.msra.mxu1 %v1783_v19 }
 0x56a   :  { %1877 = vmatprep.subr.mxu1 %v4202_v42 }
 0x56b   :  { %1878 = vmatpush2.msra.mxu1 %v2593_v13 }
 0x56c   :  { %1879 = vmatprep.subr.mxu1 %v4202_v42 }
 0x56d   :  { %1880 = vmatpush2.msra.mxu1 %v1773_v45 }
 0x56e   :  { %1881 = vmatprep.subr.mxu1 %v4202_v42 }
 0x56f   :  { %1882 = vmatpush2.msra.mxu1 %v2590_v54 }
 0x570   :  { %1883 = vmatprep.subr.mxu1 %v4202_v42 }
 0x571   :  { %1884 = vmatpush2.msra.mxu1 %v1763_v39 }
 0x572   :  { %1885 = vmatprep.subr.mxu1 %v4202_v42 }
 0x573   :  { %1886 = vmatpush2.msra.mxu1 %v2587_v36 }
 0x574   :  { %1887 = vmatprep.subr.mxu1 %v4202_v42 }
 0x575   :  { %1888 = vmatpush2.msra.mxu1 %v1753_v2 }
 0x576   :  { %1889 = vmatprep.subr.mxu1 %v4202_v42 }
 0x577   :  { %1890 = vmatpush2.msra.mxu1 %v2584_v22 }
 0x578   :  { %1891 = vmatprep.subr.mxu1 %v4202_v42 }
 0x579   :  { %1892 = vmatpush2.msra.mxu1 %v1743_v35 }
 0x57a   :  { %1894 = vmatmul.mubr.f32.vlgmr.msra.gmra.mxu1 %v3028_v5  ;;  %v4221_v5 = vld [vmem:[#allocation3_spill] sm:$0xff] }
 0x57b   :  { %1898 = vmatprep.mubr.f32.mxu1 %v3031_v6  ;;  %v4222_v6 = vld [vmem:[#allocation4_spill] sm:$0xff] }
 0x57e   :  { %1899 = vmatmul.mubr.f32.gmra.mxu1 %v3039_v8  ;;  %v4223_v8 = vld [vmem:[#allocation5_spill] sm:$0xff] }
 0x57f   :  { %1903 = vmatprep.mubr.f32.mxu1 %v3043_v9  ;;  %v4224_v9 = vld [vmem:[#allocation6_spill] sm:$0xff] }
 0x582   :  { %1904 = vmatmul.mubr.f32.gmra.mxu1 %v3049_v11  ;;  %v4225_v11 = vld [vmem:[#allocation7_spill] sm:$0xff] }
 0x583   :  { %1908 = vmatprep.mubr.f32.mxu1 %v3052_v12  ;;  %v4226_v12 = vld [vmem:[#allocation8_spill] sm:$0xff] }
 0x586   :  { %1909 = vmatmul.mubr.f32.gmra.mxu1 %v3058_v14  ;;  %v4227_v14 = vld [vmem:[#allocation9_spill] sm:$0xff] }
 0x587   :  { %1913 = vmatprep.mubr.f32.mxu1 %v3061_v15  ;;  %v4228_v15 = vld [vmem:[#allocation10_spill] sm:$0xff] }
 0x58a   :  { %1914 = vmatmul.mubr.f32.gmra.mxu1 %v3067_v17  ;;  %v4229_v17 = vld [vmem:[#allocation11_spill] sm:$0xff] }
 0x58b   :  { %1918 = vmatprep.mubr.f32.mxu1 %v3070_v18  ;;  %v4230_v18 = vld [vmem:[#allocation12_spill] sm:$0xff] }
 0x58e   :  { %1919 = vmatmul.mubr.f32.gmra.mxu1 %v3076_v20  ;;  %v4231_v20 = vld [vmem:[#allocation13_spill] sm:$0xff] }
 0x58f   :  { %1923 = vmatprep.mubr.f32.mxu1 %v3079_v21  ;;  %v4232_v21 = vld [vmem:[#allocation14_spill] sm:$0xff] }
 0x592   :  { %1924 = vmatmul.mubr.f32.gmra.mxu1 %v3085_v23  ;;  %v4233_v23 = vld [vmem:[#allocation15_spill] sm:$0xff] }
 0x593   :  { %1928 = vmatprep.mubr.f32.mxu1 %v3088_v24  ;;  %v4234_v24 = vld [vmem:[#allocation16_spill] sm:$0xff] }
 0x596   :  { %1929 = vmatmul.mubr.f32.gmra.mxu1 %v3094_v26  ;;  %v4235_v26 = vld [vmem:[#allocation17_spill] sm:$0xff] }
 0x597   :  { %1933 = vmatprep.mubr.f32.mxu1 %v3097_v27  ;;  %v4236_v27 = vld [vmem:[#allocation18_spill] sm:$0xff] }
 0x59a   :  { %1934 = vmatmul.mubr.f32.gmra.mxu1 %v3103_v29  ;;  %v4237_v29 = vld [vmem:[#allocation19_spill] sm:$0xff] }
 0x59b   :  { %1938 = vmatprep.mubr.f32.mxu1 %v3106_v30  ;;  %v4238_v30 = vld [vmem:[#allocation20_spill] sm:$0xff] }
 0x59e   :  { %1939 = vmatmul.mubr.f32.gmra.mxu1 %v3112_v32  ;;  %v3943_v32 = vld [vmem:[#allocation2] ss:$0 sm:$0xff] }
 0x59f   :  { %1943 = vmatprep.mubr.f32.mxu1 %v3115_v34 }
 0x5a2   :  { %1944 = vmatmul.mubr.f32.gmra.mxu1 %v3121_v37 }
 0x5a3   :  { %1948 = vmatprep.mubr.f32.mxu1 %v3124_v38 }
 0x5a6   :  { %1949 = vmatmul.mubr.f32.gmra.mxu1 %v3130_v40 }
 0x5a7   :  { %1953 = vmatprep.mubr.f32.mxu1 %v3133_v41 }
 0x5aa   :  { %1954 = vmatmul.mubr.f32.gmra.mxu1 %v3139_v43 }
 0x5ab   :  { %1958 = vmatprep.mubr.f32.mxu1 %v3142_v44 }
 0x5ae   :  { %1959 = vmatmul.mubr.f32.gmra.mxu1 %v3148_v46 }
 0x5af   :  { %1963 = vmatprep.mubr.f32.mxu1 %v3151_v47 }
 0x5b2   :  { %1964 = vmatmul.mubr.f32.gmra.mxu1 %v3157_v49 }
 0x5b3   :  { %1968 = vmatprep.mubr.f32.mxu1 %v3160_v50 }
 0x5b6   :  { %1969 = vmatmul.mubr.f32.gmra.mxu1 %v3166_v52 }
 0x5b7   :  { %1973 = vmatprep.mubr.f32.mxu1 %v3169_v53 }
 0x5ba   :  { %1974 = vmatmul.mubr.f32.gmra.mxu1 %v3175_v55 }
 0x5bb   :  { %1978 = vmatprep.mubr.f32.mxu1 %v3178_v56 }
 0x5be   :  { %1979 = vmatmul.mubr.f32.gmra.mxu1 %v3184_v58 }
 0x5bf   :  { %1983 = vmatprep.mubr.f32.mxu1 %v3187_v59 }
 0x5c2   :  { %1984 = vmatmul.mubr.f32.gmra.mxu1 %v3193_v61 }
 0x5c3   :  { %1988 = vmatprep.mubr.f32.mxu1 %v3196_v62 }
 0x5c6   :  { %1989 = vmatmul.mubr.f32.gmra.mxu1 %v3202_v0 }
 0x5c7   :  { %1993 = vmatprep.mubr.f32.mxu1 %v3205_v1 }
 0x5ca   :  { %1994 = vmatmul.mubr.f32.gmra.mxu1 %v3211_v3 }
 0x5cb   :  { %1998 = vmatprep.mubr.f32.mxu1 %v3214_v4 }
 0x5ce   :  { %1999 = vmatmul.mubr.f32.gmra.mxu1 %v3220_v10 }
 0x5cf   :  { %2003 = vmatprep.mubr.f32.mxu1 %v3226_v16 }
 0x5d2   :  { %2004 = vmatmul.mubr.f32.gmra.mxu1 %v3235_v25 }
 0x5d3   :  { %2008 = vmatprep.mubr.f32.mxu1 %v4221_v5 }
 0x5d6   :  { %2009 = vmatmul.mubr.f32.gmra.mxu1 %v4222_v6 }
 0x5d7   :  { %2013 = vmatprep.mubr.f32.mxu1 %v4223_v8 }
 0x5da   :  { %2014 = vmatmul.mubr.f32.gmra.mxu1 %v4224_v9 }
 0x5db   :  { %2018 = vmatprep.mubr.f32.mxu1 %v4225_v11 }
 0x5de   :  { %2019 = vmatmul.mubr.f32.gmra.mxu1 %v4226_v12 }
 0x5df   :  { %2023 = vmatprep.mubr.f32.mxu1 %v4227_v14 }
 0x5e2   :  { %2024 = vmatmul.mubr.f32.gmra.mxu1 %v4228_v15 }
 0x5e3   :  { %2028 = vmatprep.mubr.f32.mxu1 %v4229_v17 }
 0x5e6   :  { %2029 = vmatmul.mubr.f32.gmra.mxu1 %v4230_v18 }
 0x5e7   :  { %2033 = vmatprep.mubr.f32.mxu1 %v4231_v20 }
 0x5ea   :  { %2034 = vmatmul.mubr.f32.gmra.mxu1 %v4232_v21 }
 0x5eb   :  { %2038 = vmatprep.mubr.f32.mxu1 %v4233_v23 }
 0x5ee   :  { %2039 = vmatmul.mubr.f32.gmra.mxu1 %v4234_v24 }
 0x5ef   :  { %2043 = vmatprep.mubr.f32.mxu1 %v4235_v26 }
 0x5f2   :  { %2044 = vmatmul.mubr.f32.gmra.mxu1 %v4236_v27 }
 0x5f3   :  { %2048 = vmatprep.mubr.f32.mxu1 %v4237_v29 }
 0x5f6   :  { %2049 = vmatmul.mubr.f32.gmra.mxu1 %v4238_v30 }
 0x63a   :  { %v1895_v34 = vpop.f32.mrf.mxu1 }
 0x63b   :  { %v1896_v37 = vadd.f32 %v3943_v32, %v1895_v34 }
 0x63c   :  { %v1897_v38 = vpop.f32.mrf.mxu1 }
 0x63d   :  { %2737 = vtanh.f32 %v1896_v37 }
 0x63e   :  { %v1900_v40 = vpop.f32.mrf.mxu1 }
 0x63f   :  { %v1901_v41 = vadd.f32 %v3943_v32, %v1900_v40 }
 0x640   :  { %v1902_v43 = vpop.f32.mrf.mxu1 }
 0x641   :  { %2739 = vtanh.f32 %v1901_v41 }
 0x642   :  { %v1905_v44 = vpop.f32.mrf.mxu1 }
 0x643   :  { %v1906_v46 = vadd.f32 %v3943_v32, %v1905_v44 }
 0x644   :  { %v1907_v47 = vpop.f32.mrf.mxu1 }
 0x645   :  { %2741 = vtanh.f32 %v1906_v46 }
 0x646   :  { %v1910_v49 = vpop.f32.mrf.mxu1 }
 0x647   :  { %v1911_v50 = vadd.f32 %v3943_v32, %v1910_v49 }
 0x648   :  { %v1912_v52 = vpop.f32.mrf.mxu1 }
 0x649   :  { %2743 = vtanh.f32 %v1911_v50 }
 0x64a   :  { %v2738_v53 = vpop.eup %2737  ;;  %v1915_v55 = vpop.f32.mrf.mxu1 }
 0x64b   :  { %v1916_v56 = vadd.f32 %v3943_v32, %v1915_v55  ;;  %2118 = vrot.lane.b32.xlu0 %v2738_v53, %s2803_s7 }
 0x64c   :  { %v1917_v58 = vpop.f32.mrf.mxu1 }
 0x64d   :  { %2745 = vtanh.f32 %v1916_v56 }
 0x64e   :  { %v2740_v59 = vpop.eup %2739  ;;  %v1920_v61 = vpop.f32.mrf.mxu1 }
 0x64f   :  { %v1921_v62 = vadd.f32 %v3943_v32, %v1920_v61  ;;  %2120 = vrot.lane.b32.xlu1 %v2740_v59, %s2803_s7 }
 0x650   :  { %v1922_v0 = vpop.f32.mrf.mxu1 }
 0x651   :  { %2747 = vtanh.f32 %v1921_v62 }
 0x652   :  { %v2742_v1 = vpop.eup %2741  ;;  %v1925_v3 = vpop.f32.mrf.mxu1 }
 0x653   :  { %v1926_v4 = vadd.f32 %v3943_v32, %v1925_v3  ;;  %2122 = vrot.lane.b32.xlu0 %v2742_v1, %s2803_s7 }
 0x654   :  { %v1927_v10 = vpop.f32.mrf.mxu1 }
 0x655   :  { %2749 = vtanh.f32 %v1926_v4 }
 0x656   :  { %v2744_v16 = vpop.eup %2743  ;;  %v1930_v25 = vpop.f32.mrf.mxu1 }
 0x657   :  { %v1931_v42 = vadd.f32 %v3943_v32, %v1930_v25  ;;  %2124 = vrot.lane.b32.xlu1 %v2744_v16, %s2803_s7 }
 0x658   :  { %v1932_v28 = vpop.f32.mrf.mxu1 }
 0x659   :  { %2751 = vtanh.f32 %v1931_v42 }
 0x65a   :  { %v2746_v22 = vpop.eup %2745  ;;  %v1935_v35 = vpop.f32.mrf.mxu1 }
 0x65b   :  { %v1936_v36 = vadd.f32 %v3943_v32, %v1935_v35  ;;  %2126 = vrot.lane.b32.xlu0 %v2746_v22, %s2803_s7 }
 0x65c   :  { %v1937_v2 = vpop.f32.mrf.mxu1 }
 0x65d   :  { %2753 = vtanh.f32 %v1936_v36 }
 0x65e   :  { %v2748_v54 = vpop.eup %2747  ;;  %v1940_v39 = vpop.f32.mrf.mxu1 }
 0x65f   :  { %v1941_v13 = vadd.f32 %v3943_v32, %v1940_v39  ;;  %2128 = vrot.lane.b32.xlu1 %v2748_v54, %s2803_s7 }
 0x660   :  { %v1942_v45 = vpop.f32.mrf.mxu1 }
 0x661   :  { %2755 = vtanh.f32 %v1941_v13 }
 0x662   :  { %v2750_v60 = vpop.eup %2749  ;;  %v1945_v19 = vpop.f32.mrf.mxu1 }
 0x663   :  { %v1946_v48 = vadd.f32 %v3943_v32, %v1945_v19  ;;  %2130 = vrot.lane.b32.xlu0 %v2750_v60, %s2803_s7 }
 0x664   :  { %v1947_v63 = vpop.f32.mrf.mxu1 }
 0x665   :  { %2757 = vtanh.f32 %v1946_v48 }
 0x666   :  { %v2752_v57 = vpop.eup %2751  ;;  %v1950_v7 = vpop.f32.mrf.mxu1 }
 0x667   :  { %v1951_v33 = vadd.f32 %v3943_v32, %v1950_v7  ;;  %2132 = vrot.lane.b32.xlu1 %v2752_v57, %s2803_s7 }
 0x668   :  { %v1952_v31 = vpop.f32.mrf.mxu1 }
 0x669   :  { %2759 = vtanh.f32 %v1951_v33 }
 0x66a   :  { %v2754_v51 = vpop.eup %2753  ;;  %v1955_v5 = vpop.f32.mrf.mxu1 }
 0x66b   :  { %v1956_v6 = vadd.f32 %v3943_v32, %v1955_v5  ;;  %2134 = vrot.lane.b32.xlu0 %v2754_v51, %s2803_s7 }
 0x66c   :  { %v1957_v8 = vpop.f32.mrf.mxu1 }
 0x66d   :  { %2761 = vtanh.f32 %v1956_v6 }
 0x66e   :  { %v2756_v9 = vpop.eup %2755  ;;  %v1960_v11 = vpop.f32.mrf.mxu1 }
 0x66f   :  { %v1961_v12 = vadd.f32 %v3943_v32, %v1960_v11  ;;  %2136 = vrot.lane.b32.xlu1 %v2756_v9, %s2803_s7 }
 0x670   :  { %v1962_v14 = vpop.f32.mrf.mxu1 }
 0x671   :  { %2763 = vtanh.f32 %v1961_v12 }
 0x672   :  { %v2758_v15 = vpop.eup %2757  ;;  %v1965_v17 = vpop.f32.mrf.mxu1 }
 0x673   :  { %v1966_v18 = vadd.f32 %v3943_v32, %v1965_v17  ;;  %2138 = vrot.lane.b32.xlu0 %v2758_v15, %s2803_s7 }
 0x674   :  { %v1967_v20 = vpop.f32.mrf.mxu1 }
 0x675   :  { %2765 = vtanh.f32 %v1966_v18 }
 0x676   :  { %v2760_v21 = vpop.eup %2759  ;;  %v1970_v23 = vpop.f32.mrf.mxu1 }
 0x677   :  { %v1971_v24 = vadd.f32 %v3943_v32, %v1970_v23  ;;  %2140 = vrot.lane.b32.xlu1 %v2760_v21, %s2803_s7 }
 0x678   :  { %v1972_v26 = vpop.f32.mrf.mxu1 }
 0x679   :  { %2767 = vtanh.f32 %v1971_v24 }
 0x67a   :  { %v2762_v27 = vpop.eup %2761  ;;  %v1975_v29 = vpop.f32.mrf.mxu1 }
 0x67b   :  { %v1976_v30 = vadd.f32 %v3943_v32, %v1975_v29  ;;  %2142 = vrot.lane.b32.xlu0 %v2762_v27, %s2803_s7 }
 0x67c   :  { %v1977_v34 = vpop.f32.mrf.mxu1 }
 0x67d   :  { %2769 = vtanh.f32 %v1976_v30 }
 0x67e   :  { %v2764_v37 = vpop.eup %2763  ;;  %v1980_v38 = vpop.f32.mrf.mxu1 }
 0x67f   :  { %v1981_v40 = vadd.f32 %v3943_v32, %v1980_v38  ;;  %2144 = vrot.lane.b32.xlu1 %v2764_v37, %s2803_s7 }
 0x680   :  { %v1982_v41 = vpop.f32.mrf.mxu1 }
 0x681   :  { %2771 = vtanh.f32 %v1981_v40 }
 0x682   :  { %v2766_v43 = vpop.eup %2765  ;;  %v1985_v44 = vpop.f32.mrf.mxu1 }
 0x683   :  { %v1986_v46 = vadd.f32 %v3943_v32, %v1985_v44  ;;  %2146 = vrot.lane.b32.xlu0 %v2766_v43, %s2803_s7 }
 0x684   :  { %v1987_v47 = vpop.f32.mrf.mxu1 }
 0x685   :  { %2773 = vtanh.f32 %v1986_v46 }
 0x686   :  { %v2768_v49 = vpop.eup %2767  ;;  %v1990_v50 = vpop.f32.mrf.mxu1 }
 0x687   :  { %v1991_v52 = vadd.f32 %v3943_v32, %v1990_v50  ;;  %2148 = vrot.lane.b32.xlu1 %v2768_v49, %s2803_s7 }
 0x688   :  { %v1992_v53 = vpop.f32.mrf.mxu1 }
 0x689   :  { %2775 = vtanh.f32 %v1991_v52 }
 0x68a   :  { %v2770_v55 = vpop.eup %2769  ;;  %v1995_v56 = vpop.f32.mrf.mxu1 }
 0x68b   :  { %v1996_v58 = vadd.f32 %v3943_v32, %v1995_v56  ;;  %2150 = vrot.lane.b32.xlu0 %v2770_v55, %s2803_s7 }
 0x68c   :  { %v1997_v59 = vpop.f32.mrf.mxu1 }
 0x68d   :  { %2777 = vtanh.f32 %v1996_v58 }
 0x68e   :  { %v2772_v61 = vpop.eup %2771  ;;  %v2000_v62 = vpop.f32.mrf.mxu1 }
 0x68f   :  { %v2001_v0 = vadd.f32 %v3943_v32, %v2000_v62  ;;  %2152 = vrot.lane.b32.xlu1 %v2772_v61, %s2803_s7 }
 0x690   :  { %v2002_v1 = vpop.f32.mrf.mxu1 }
 0x691   :  { %2779 = vtanh.f32 %v2001_v0 }
 0x692   :  { %v2774_v3 = vpop.eup %2773  ;;  %v2005_v4 = vpop.f32.mrf.mxu1 }
 0x693   :  { %v2006_v10 = vadd.f32 %v3943_v32, %v2005_v4  ;;  %2154 = vrot.lane.b32.xlu0 %v2774_v3, %s2803_s7 }
 0x694   :  { %v2007_v16 = vpop.f32.mrf.mxu1 }
 0x695   :  { %2781 = vtanh.f32 %v2006_v10 }
 0x696   :  { %v2776_v25 = vpop.eup %2775  ;;  %v2010_v42 = vpop.f32.mrf.mxu1 }
 0x697   :  { %v2011_v28 = vadd.f32 %v3943_v32, %v2010_v42  ;;  %2156 = vrot.lane.b32.xlu1 %v2776_v25, %s2803_s7 }
 0x698   :  { %v2012_v22 = vpop.f32.mrf.mxu1 }
 0x699   :  { %2783 = vtanh.f32 %v2011_v28 }
 0x69a   :  { %v2778_v35 = vpop.eup %2777  ;;  %v2015_v36 = vpop.f32.mrf.mxu1 }
 0x69b   :  { %v2016_v2 = vadd.f32 %v3943_v32, %v2015_v36  ;;  %2158 = vrot.lane.b32.xlu0 %v2778_v35, %s2803_s7 }
 0x69c   :  { %v2017_v54 = vpop.f32.mrf.mxu1 }
 0x69d   :  { %2785 = vtanh.f32 %v2016_v2 }
 0x69e   :  { %v2780_v39 = vpop.eup %2779  ;;  %v2020_v13 = vpop.f32.mrf.mxu1 }
 0x69f   :  { %v2021_v45 = vadd.f32 %v3943_v32, %v2020_v13  ;;  %2160 = vrot.lane.b32.xlu1 %v2780_v39, %s2803_s7 }
 0x6a0   :  { %v2022_v60 = vpop.f32.mrf.mxu1 }
 0x6a1   :  { %2787 = vtanh.f32 %v2021_v45 }
 0x6a2   :  { %v2782_v19 = vpop.eup %2781  ;;  %v2025_v48 = vpop.f32.mrf.mxu1 }
 0x6a3   :  { %v2026_v63 = vadd.f32 %v3943_v32, %v2025_v48  ;;  %2162 = vrot.lane.b32.xlu0 %v2782_v19, %s2803_s7 }
 0x6a4   :  { %v2027_v57 = vpop.f32.mrf.mxu1 }
 0x6a5   :  { %2789 = vtanh.f32 %v2026_v63 }
 0x6a6   :  { %v2784_v7 = vpop.eup %2783  ;;  %v2030_v33 = vpop.f32.mrf.mxu1 }
 0x6a7   :  { %v2031_v31 = vadd.f32 %v3943_v32, %v2030_v33  ;;  %2164 = vrot.lane.b32.xlu1 %v2784_v7, %s2803_s7 }
 0x6a8   :  { %v2032_v51 = vpop.f32.mrf.mxu1 }
 0x6a9   :  { %2791 = vtanh.f32 %v2031_v31 }
 0x6aa   :  { %v2786_v5 = vpop.eup %2785  ;;  %v2035_v6 = vpop.f32.mrf.mxu1 }
 0x6ab   :  { %v2036_v8 = vadd.f32 %v3943_v32, %v2035_v6  ;;  %2166 = vrot.lane.b32.xlu0 %v2786_v5, %s2803_s7 }
 0x6ac   :  { %v2037_v9 = vpop.f32.mrf.mxu1 }
 0x6ad   :  { %2793 = vtanh.f32 %v2036_v8 }
 0x6ae   :  { %v2788_v11 = vpop.eup %2787  ;;  %v2040_v12 = vpop.f32.mrf.mxu1 }
 0x6af   :  { %v2041_v14 = vadd.f32 %v3943_v32, %v2040_v12  ;;  %2168 = vrot.lane.b32.xlu1 %v2788_v11, %s2803_s7 }
 0x6b0   :  { %v2042_v15 = vpop.f32.mrf.mxu1 }
 0x6b1   :  { %2795 = vtanh.f32 %v2041_v14 }
 0x6b2   :  { %v2790_v17 = vpop.eup %2789  ;;  %v2045_v18 = vpop.f32.mrf.mxu1 }
 0x6b3   :  { %v2046_v20 = vadd.f32 %v3943_v32, %v2045_v18  ;;  %2170 = vrot.lane.b32.xlu0 %v2790_v17, %s2803_s7 }
 0x6b4   :  { %v2047_v21 = vpop.f32.mrf.mxu1 }
 0x6b5   :  { %2797 = vtanh.f32 %v2046_v20 }
 0x6b6   :  { %v2792_v23 = vpop.eup %2791  ;;  %v2050_v24 = vpop.f32.mrf.mxu1 }
 0x6b7   :  { %v2051_v26 = vadd.f32 %v3943_v32, %v2050_v24  ;;  %2172 = vrot.lane.b32.xlu1 %v2792_v23, %s2803_s7 }
 0x6b8   :  { %v2052_v27 = vpop.f32.mrf.mxu1 }
 0x6b9   :  { %2799 = vtanh.f32 %v2051_v26 }
 0x6ba   :  { %v2794_v29 = vpop.eup %2793 }
 0x6bb   :  { %2174 = vrot.lane.b32.xlu0 %v2794_v29, %s2803_s7 }
 0x6bd   :  { %v2119_v30 = vpop.permute.xlu0 %2118 }
 0x6be   :  { %v2796_v34 = vpop.eup %2795  ;;  %2215 = vst.msk [vmem:[%s4142_s8] sm:$0xff] %vm2214_vm4, %v2119_v30 }
 0x6bf   :  { %2176 = vrot.lane.b32.xlu1 %v2796_v34, %s2803_s7 }
 0x6c1   :  { %v2121_v37 = vpop.permute.xlu1 %2120 }
 0x6c2   :  { %v2798_v38 = vpop.eup %2797  ;;  %2216 = vst.msk [vmem:[%s4142_s8 + $0x8] sm:$0xff] %vm2214_vm4, %v2121_v37 }
 0x6c3   :  { %2178 = vrot.lane.b32.xlu0 %v2798_v38, %s2803_s7 }
 0x6c5   :  { %v2123_v32 = vpop.permute.xlu0 %2122 }
 0x6c6   :  { %v2800_v40 = vpop.eup %2799  ;;  %2217 = vst.msk [vmem:[%s4142_s8 + $0x10] sm:$0xff] %vm2214_vm4, %v2123_v32 }
 0x6c7   :  { %2180 = vrot.lane.b32.xlu1 %v2800_v40, %s2803_s7 }
 0x6c9   :  { %v2125_v41 = vpop.permute.xlu1 %2124 }
 0x6ca   :  { %2218 = vst.msk [vmem:[%s4142_s8 + $0x18] sm:$0xff] %vm2214_vm4, %v2125_v41 }
 0x6cd   :  { %v2127_v43 = vpop.permute.xlu0 %2126 }
 0x6ce   :  { %2219 = vst.msk [vmem:[%s4142_s8 + $0x20] sm:$0xff] %vm2214_vm4, %v2127_v43 }
 0x6d1   :  { %v2129_v44 = vpop.permute.xlu1 %2128 }
 0x6d2   :  { %2220 = vst.msk [vmem:[%s4142_s8 + $0x28] sm:$0xff] %vm2214_vm4, %v2129_v44 }
 0x6d5   :  { %v2131_v46 = vpop.permute.xlu0 %2130 }
 0x6d6   :  { %2221 = vst.msk [vmem:[%s4142_s8 + $0x30] sm:$0xff] %vm2214_vm4, %v2131_v46 }
 0x6d9   :  { %v2133_v47 = vpop.permute.xlu1 %2132 }
 0x6da   :  { %2222 = vst.msk [vmem:[%s4142_s8 + $0x38] sm:$0xff] %vm2214_vm4, %v2133_v47 }
 0x6dd   :  { %v2135_v49 = vpop.permute.xlu0 %2134 }
 0x6de   :  { %2223 = vst.msk [vmem:[%s4142_s8 + $0x40] sm:$0xff] %vm2214_vm4, %v2135_v49 }
 0x6e1   :  { %v2137_v50 = vpop.permute.xlu1 %2136 }
 0x6e2   :  { %2224 = vst.msk [vmem:[%s4142_s8 + $0x48] sm:$0xff] %vm2214_vm4, %v2137_v50 }
 0x6e5   :  { %v2139_v52 = vpop.permute.xlu0 %2138 }
 0x6e6   :  { %2225 = vst.msk [vmem:[%s4142_s8 + $0x50] sm:$0xff] %vm2214_vm4, %v2139_v52 }
 0x6e9   :  { %v2141_v53 = vpop.permute.xlu1 %2140 }
 0x6ea   :  { %2226 = vst.msk [vmem:[%s4142_s8 + $0x58] sm:$0xff] %vm2214_vm4, %v2141_v53 }
 0x6ed   :  { %v2143_v55 = vpop.permute.xlu0 %2142 }
 0x6ee   :  { %2227 = vst.msk [vmem:[%s4142_s8 + $0x60] sm:$0xff] %vm2214_vm4, %v2143_v55 }
 0x6f1   :  { %v2145_v56 = vpop.permute.xlu1 %2144 }
 0x6f2   :  { %2228 = vst.msk [vmem:[%s4142_s8 + $0x68] sm:$0xff] %vm2214_vm4, %v2145_v56 }
 0x6f5   :  { %v2147_v58 = vpop.permute.xlu0 %2146 }
 0x6f6   :  { %2229 = vst.msk [vmem:[%s4142_s8 + $0x70] sm:$0xff] %vm2214_vm4, %v2147_v58 }
 0x6f9   :  { %v2149_v59 = vpop.permute.xlu1 %2148 }
 0x6fa   :  { %2230 = vst.msk [vmem:[%s4142_s8 + $0x78] sm:$0xff] %vm2214_vm4, %v2149_v59 }
 0x6fd   :  { %v2151_v61 = vpop.permute.xlu0 %2150 }
 0x6fe   :  { %2231 = vst.msk [vmem:[%s4142_s8 + $0x80] sm:$0xff] %vm2214_vm4, %v2151_v61 }
 0x701   :  { %v2153_v62 = vpop.permute.xlu1 %2152 }
 0x702   :  { %2232 = vst.msk [vmem:[%s4142_s8 + $0x88] sm:$0xff] %vm2214_vm4, %v2153_v62 }
 0x705   :  { %v2155_v0 = vpop.permute.xlu0 %2154 }
 0x706   :  { %2233 = vst.msk [vmem:[%s4142_s8 + $0x90] sm:$0xff] %vm2214_vm4, %v2155_v0 }
 0x709   :  { %v2157_v1 = vpop.permute.xlu1 %2156 }
 0x70a   :  { %2234 = vst.msk [vmem:[%s4142_s8 + $0x98] sm:$0xff] %vm2214_vm4, %v2157_v1 }
 0x70d   :  { %v2159_v3 = vpop.permute.xlu0 %2158 }
 0x70e   :  { %2235 = vst.msk [vmem:[%s4142_s8 + $0xa0] sm:$0xff] %vm2214_vm4, %v2159_v3 }
 0x711   :  { %v2161_v4 = vpop.permute.xlu1 %2160 }
 0x712   :  { %2236 = vst.msk [vmem:[%s4142_s8 + $0xa8] sm:$0xff] %vm2214_vm4, %v2161_v4 }
 0x715   :  { %v2163_v10 = vpop.permute.xlu0 %2162 }
 0x716   :  { %2237 = vst.msk [vmem:[%s4142_s8 + $0xb0] sm:$0xff] %vm2214_vm4, %v2163_v10 }
 0x719   :  { %v2165_v16 = vpop.permute.xlu1 %2164 }
 0x71a   :  { %2238 = vst.msk [vmem:[%s4142_s8 + $0xb8] sm:$0xff] %vm2214_vm4, %v2165_v16 }
 0x71d   :  { %v2167_v25 = vpop.permute.xlu0 %2166 }
 0x71e   :  { %2239 = vst.msk [vmem:[%s4142_s8 + $0xc0] sm:$0xff] %vm2214_vm4, %v2167_v25 }
 0x721   :  { %v2169_v42 = vpop.permute.xlu1 %2168 }
 0x722   :  { %2240 = vst.msk [vmem:[%s4142_s8 + $0xc8] sm:$0xff] %vm2214_vm4, %v2169_v42 }
 0x725   :  { %v2171_v28 = vpop.permute.xlu0 %2170 }
 0x726   :  { %2241 = vst.msk [vmem:[%s4142_s8 + $0xd0] sm:$0xff] %vm2214_vm4, %v2171_v28 }
 0x729   :  { %v2173_v22 = vpop.permute.xlu1 %2172 }
 0x72a   :  { %2242 = vst.msk [vmem:[%s4142_s8 + $0xd8] sm:$0xff] %vm2214_vm4, %v2173_v22 }
 0x72d   :  { %v2175_v35 = vpop.permute.xlu0 %2174 }
 0x72e   :  { %2243 = vst.msk [vmem:[%s4142_s8 + $0xe0] sm:$0xff] %vm2214_vm4, %v2175_v35 }
 0x731   :  { %v2177_v36 = vpop.permute.xlu1 %2176 }
 0x732   :  { %2244 = vst.msk [vmem:[%s4142_s8 + $0xe8] sm:$0xff] %vm2214_vm4, %v2177_v36 }
 0x735   :  { %v2179_v2 = vpop.permute.xlu0 %2178 }
 0x736   :  { %2245 = vst.msk [vmem:[%s4142_s8 + $0xf0] sm:$0xff] %vm2214_vm4, %v2179_v2 }
 0x739   :  { %v2181_v54 = vpop.permute.xlu1 %2180 }
 0x73a   :  { %2246 = vst.msk [vmem:[%s4142_s8 + $0xf8] sm:$0xff] %vm2214_vm4, %v2181_v54 }

</bundles_post_ra>
